<compile_context>
chip_gen: v7x
topology: tpu7x:2x2x1
jax: 0.10.0
libtpu: 0.0.40
codegen_flags: <defaults>
</compile_context>

<pallas_src>
import functools

import jax
import jax.numpy as jnp
from jax.experimental import pallas as pl
from jax.experimental.pallas import tpu as pltpu


F_PAD = 128  # lane-dense feature padding


# ----------------------------- Pallas kernel ------------------------------

def _gat_policy_fused_kernel(num_heads, hidden_dim,
                             x_ref, adjb_ref, eattr_ref,
                             w_ref, adst_ref, asrc_ref, c_ref, b_ref,
                             pool_ref, lw_ref, lb_ref,
                             o_ref):
    """Fused: 3x (GATConv + bias + ReLU) -> global_mean_pool -> Linear -> tanh."""
    H, F = num_heads, hidden_dim
    L = w_ref.shape[0]
    n = x_ref.shape[0]

    # graph tensors loaded once (hoisted out of the layer loop)
    adj_bias = adjb_ref[...]                              # [N, N] f32: 0 edge / -1e30 non-edge
    eattr = eattr_ref[...]                                # [N, N] f32

    feats = x_ref[...]                                    # [N, F_PAD] bf16 (register value)
    act = None                                            # last-layer f32 activation

    for l in range(L):
        # ---- projection (bf16 operands, f32 accumulation) ----
        xw = jnp.dot(feats, w_ref[l], preferred_element_type=jnp.float32)   # [N, F_PAD]
        xw_bf = xw.astype(jnp.bfloat16)

        # ---- attention logit terms, each in its natural orientation ----
        # a_dst: [N, H] (dst varies along sublanes);  a_srcT: [H, N] (src along lanes)
        a_dst = jnp.dot(xw_bf, adst_ref[l], preferred_element_type=jnp.float32)
        a_srcT = jax.lax.dot_general(asrc_ref[l], xw_bf,
                                     (((1,), (1,)), ((), ())),
                                     preferred_element_type=jnp.float32)

        # ---- batched score slab [H, N, N]; single stack per layer ----
        # s[h, i, j] = a_dst[i, h] + a_src[j, h] + eattr[i, j] * c[h]
        s = jnp.stack(
            [a_dst[:, hh:hh + 1] + a_srcT[hh:hh + 1, :] + eattr * c_ref[l, hh]
             for hh in range(H)],
            axis=0)                                        # [H, N, N]

        # softmax math runs ONCE over the batched slab
        s = jnp.where(s >= 0.0, s, 0.2 * s)               # LeakyReLU(0.2)
        s = s + adj_bias[None, :, :]                      # additive mask (hoisted)
        m = jnp.max(s, axis=-1, keepdims=True)
        p = jnp.exp(s - m)                                # masked entries underflow to 0
        denom = jnp.sum(p, axis=-1, keepdims=True)        # >= 1 thanks to self-loops
        attn = (p / denom).astype(jnp.bfloat16)           # exact softmax over src j

        # ---- per-head aggregation, assembled into ONE lane-dense register value ----
        heads = [jnp.dot(attn[hh], xw_bf[:, hh * F:(hh + 1) * F],
                         preferred_element_type=jnp.float32)
                 for hh in range(H)]                       # H x [N, F]
        if H * F < F_PAD:
            heads.append(jnp.zeros((n, F_PAD - H * F), jnp.float32))
        out_pad = jnp.concatenate(heads, axis=-1)          # [N, F_PAD]
        act = jnp.maximum(out_pad + b_ref[l], 0.0)         # bias + ReLU (pad cols stay 0)
        feats = act.astype(jnp.bfloat16)                   # no VMEM scratch round-trip

    # ---- global_mean_pool (f32 pooling weights for exact means) + Linear + tanh ----
    pooled = jnp.dot(pool_ref[...], act, preferred_element_type=jnp.float32)     # [G, F_PAD]
    logits = jnp.dot(pooled.astype(jnp.bfloat16), lw_ref[...],
                     preferred_element_type=jnp.float32) + lb_ref[...]
    o_ref[...] = jnp.tanh(logits)


# ------------------------------ JAX wrapper --------------------------------

_VMEM = pl.BlockSpec(memory_space=pltpu.MemorySpace.VMEM)
_SMEM = pl.BlockSpec(memory_space=pltpu.MemorySpace.SMEM)


def gat_policy_forward(x_pad, adj_bias, eattr, pool_mat, packed, *,
                       num_heads, hidden_dim, act_dims):
    g = pool_mat.shape[0]
    kernel = functools.partial(_gat_policy_fused_kernel, num_heads, hidden_dim)
    out_full = pl.pallas_call(
        kernel,
        out_shape=jax.ShapeDtypeStruct((g, F_PAD), jnp.float32),
        in_specs=[_VMEM, _VMEM, _VMEM,                       # x, adj_bias, eattr
                  _VMEM, _VMEM, _VMEM, _SMEM, _VMEM,         # W, adst, asrc, c, bias
                  _VMEM, _VMEM, _VMEM],                      # pool, lin_w, lin_b
        out_specs=_VMEM,
        compiler_params=pltpu.CompilerParams(vmem_limit_bytes=32 * 1024 * 1024),
    )(x_pad, adj_bias, eattr,
      packed["w"], packed["adst"], packed["asrc"], packed["c"], packed["b"],
      pool_mat, packed["lin_w"], packed["lin_b"])
    return out_full[:, :act_dims]


# --------------------------- parameter construction -------------------------

def _glorot(key, shape):
    fan_in, fan_out = shape[0], shape[-1]
    lim = (6.0 / (fan_in + fan_out)) ** 0.5
    return jax.random.uniform(key, shape, jnp.float32, -lim, lim)


def init_gat_params(key, in_dim, out_per_head, num_heads):
    ks = jax.random.split(key, 5)
    hf = num_heads * out_per_head
    return {
        "W": _glorot(ks[0], (in_dim, hf)),                    # lin_src (== lin_dst), no bias
        "att_src": _glorot(ks[1], (num_heads, out_per_head)),
        "att_dst": _glorot(ks[2], (num_heads, out_per_head)),
        "att_edge": _glorot(ks[3], (num_heads, out_per_head)),
        "w_edge": _glorot(ks[4], (1, hf)),                    # lin_edge (edge_dim=1, no bias)
        "bias": jnp.zeros((hf,), jnp.float32),
    }


def pack_params(params, num_heads, hidden_dim, obs_dims, act_dims):
    """Pad to 128-lane feature tiles, stack the 3 layers, cast MXU operands to bf16."""
    L = 3
    hf = num_heads * hidden_dim
    in_dims = [obs_dims, hf, hf]
    assert hf <= F_PAD and obs_dims <= F_PAD and act_dims <= F_PAD

    w_stack = jnp.zeros((L, F_PAD, F_PAD), jnp.float32)
    adst_stack = jnp.zeros((L, F_PAD, num_heads), jnp.float32)   # columns: xw @ adst -> [N, H]
    asrc_stack = jnp.zeros((L, num_heads, F_PAD), jnp.float32)   # rows: asrc @ xw^T -> [H, N]
    c_stack = jnp.zeros((L, num_heads), jnp.float32)
    b_stack = jnp.zeros((L, 1, F_PAD), jnp.float32)
    for l, name in enumerate(["gat1", "gat2", "gat3"]):
        p = params[name]
        w_stack = w_stack.at[l, :in_dims[l], :hf].set(p["W"])
        for h in range(num_heads):
            lo, hi = h * hidden_dim, (h + 1) * hidden_dim
            adst_stack = adst_stack.at[l, lo:hi, h].set(p["att_dst"][h])
            asrc_stack = asrc_stack.at[l, h, lo:hi].set(p["att_src"][h])
        # edge_dim == 1  ->  alpha_edge[e, h] = edge_attr[e] * c[h]
        w_edge_h = p["w_edge"][0].reshape(num_heads, hidden_dim)
        c_stack = c_stack.at[l].set(jnp.sum(w_edge_h * p["att_edge"], axis=-1))
        b_stack = b_stack.at[l, 0, :hf].set(p["bias"])

    lin_w = jnp.zeros((F_PAD, F_PAD), jnp.float32).at[:hf, :act_dims].set(params["lin_w"])
    lin_b = jnp.zeros((1, F_PAD), jnp.float32).at[0, :act_dims].set(params["lin_b"])

    return {"w": w_stack.astype(jnp.bfloat16),
            "adst": adst_stack.astype(jnp.bfloat16),
            "asrc": asrc_stack.astype(jnp.bfloat16),
            "c": c_stack,                       # f32, SMEM scalars
            "b": b_stack,                       # f32
            "lin_w": lin_w.astype(jnp.bfloat16),
            "lin_b": lin_b}


def densify_graph(edge_index, edge_attr, num_nodes):
    """Dense [dst, src] additive mask & edge-attr with self-loops (fill_value='mean').

    Matches PyG: remove_self_loops, then add_self_loops whose edge_attr is the
    per-dst-node mean of incoming edge attributes.  Assumes a simple graph
    (no duplicate edges).
    """
    src, dst = edge_index[0], edge_index[1]
    ea = edge_attr[:, 0]
    keep = (src != dst).astype(jnp.float32)               # remove_self_loops
    mask = jnp.zeros((num_nodes, num_nodes), jnp.float32).at[dst, src].add(keep)
    eattr = jnp.zeros((num_nodes, num_nodes), jnp.float32).at[dst, src].add(keep * ea)
    deg = jnp.zeros((num_nodes,), jnp.float32).at[dst].add(keep)
    ssum = jnp.zeros((num_nodes,), jnp.float32).at[dst].add(keep * ea)
    loop_attr = ssum / jnp.maximum(deg, 1.0)               # fill_value='mean' (per dst)
    idx = jnp.arange(num_nodes)
    mask = mask.at[idx, idx].set(1.0)                      # add_self_loops
    eattr = eattr.at[idx, idx].set(loop_attr)
    adj_bias = (mask - 1.0) * 1e30                         # 0 on edges, -1e30 elsewhere
    # NOTE: for large N, store adj_bias/eattr as bf16 to halve the O(N^2) DMA.
    return adj_bias, eattr


def build_pool_matrix(batch, num_graphs):
    n = batch.shape[0]
    onehot = (batch[None, :] == jnp.arange(num_graphs)[:, None]).astype(jnp.float32)  # [G, N]
    counts = jnp.sum(onehot, axis=1, keepdims=True)
    return onehot / jnp.maximum(counts, 1.0)               # kept f32 for exact means


# ------------------------------------ main -----------------------------------

if __name__ == "__main__":
    # model hyperparameters (config['train']['model_params'])
    NUM_HEADS = 2
    HIDDEN_DIM = 16
    OBS_DIMS = 8
    ACT_DIMS = 4

    # graph: 2 graphs of 8 nodes each, bidirectional ring edges within each graph
    NODES_PER_GRAPH = 8
    NUM_GRAPHS = 2
    N = NODES_PER_GRAPH * NUM_GRAPHS

    src, dst = [], []
    for g in range(NUM_GRAPHS):
        for i in range(NODES_PER_GRAPH):
            a = g * NODES_PER_GRAPH + i
            b = g * NODES_PER_GRAPH + (i + 1) % NODES_PER_GRAPH
            src += [a, b]
            dst += [b, a]
    edge_index = jnp.array([src, dst], dtype=jnp.int32)            # [2, E]
    E = edge_index.shape[1]

    key = jax.random.PRNGKey(0)
    k_x, k_e, k1, k2, k3, k4, k5 = jax.random.split(key, 7)

    x = jax.random.normal(k_x, (N, OBS_DIMS), jnp.float32)
    edge_attr = jax.random.normal(k_e, (E, 1), jnp.float32)
    batch = jnp.repeat(jnp.arange(NUM_GRAPHS, dtype=jnp.int32), NODES_PER_GRAPH)

    hf = NUM_HEADS * HIDDEN_DIM
    params = {
        "gat1": init_gat_params(k1, OBS_DIMS, HIDDEN_DIM, NUM_HEADS),
        "gat2": init_gat_params(k2, hf, HIDDEN_DIM, NUM_HEADS),
        "gat3": init_gat_params(k3, hf, HIDDEN_DIM, NUM_HEADS),
        "lin_w": _glorot(k4, (hf, ACT_DIMS)),
        "lin_b": 0.01 * jax.random.normal(k5, (ACT_DIMS,), jnp.float32),
    }

    # Everything static (graph topology, params, pooling matrix, padded features)
    # is built once outside the per-call path; the jitted forward is a single
    # pallas_call plus one small output slice.
    adj_bias, eattr = densify_graph(edge_index, edge_attr, N)
    pool_mat = build_pool_matrix(batch, NUM_GRAPHS)
    packed = pack_params(params, NUM_HEADS, HIDDEN_DIM, OBS_DIMS, ACT_DIMS)
    x_pad = jnp.zeros((N, F_PAD), jnp.float32).at[:, :OBS_DIMS].set(x).astype(jnp.bfloat16)

    forward = jax.jit(functools.partial(gat_policy_forward,
                                        num_heads=NUM_HEADS,
                                        hidden_dim=HIDDEN_DIM,
                                        act_dims=ACT_DIMS))
    out = forward(x_pad, adj_bias, eattr, pool_mat, packed)
    out = jax.block_until_ready(out)
    assert out.shape == (NUM_GRAPHS, ACT_DIMS)
    assert bool(jnp.all(jnp.isfinite(out)))
    print("KERNEL_OK")
</pallas_src>

<mosaic_0001>
module attributes {stable_mosaic.version = 11 : i64} {
  func.func @_gat_policy_fused_kernel(%arg0: memref<16x128xbf16, #tpu.memory_space<vmem>>, %arg1: memref<16x16xf32, #tpu.memory_space<vmem>>, %arg2: memref<16x16xf32, #tpu.memory_space<vmem>>, %arg3: memref<3x128x128xbf16, #tpu.memory_space<vmem>>, %arg4: memref<3x128x2xbf16, #tpu.memory_space<vmem>>, %arg5: memref<3x2x128xbf16, #tpu.memory_space<vmem>>, %arg6: memref<3x2xf32, #tpu.memory_space<smem>>, %arg7: memref<3x1x128xf32, #tpu.memory_space<vmem>>, %arg8: memref<2x16xf32, #tpu.memory_space<vmem>>, %arg9: memref<128x128xbf16, #tpu.memory_space<vmem>>, %arg10: memref<1x128xf32, #tpu.memory_space<vmem>>, %arg11: memref<2x128xf32, #tpu.memory_space<vmem>>) attributes {dimension_semantics = [], scalar_prefetch = 0 : i64, scratch_operands = 0 : i64, tpu.core_type = #tpu.core_type<tc>} {
    %c0 = arith.constant 0 : index
    %c0_0 = arith.constant 0 : index
    %0 = vector.load %arg1[%c0, %c0_0] : memref<16x16xf32, #tpu.memory_space<vmem>>, vector<16x16xf32>
    %c0_1 = arith.constant 0 : index
    %c0_2 = arith.constant 0 : index
    %1 = vector.load %arg2[%c0_1, %c0_2] : memref<16x16xf32, #tpu.memory_space<vmem>>, vector<16x16xf32>
    %c0_3 = arith.constant 0 : index
    %c0_4 = arith.constant 0 : index
    %2 = vector.load %arg0[%c0_3, %c0_4] : memref<16x128xbf16, #tpu.memory_space<vmem>>, vector<16x128xbf16>
    %c0_5 = arith.constant 0 : index
    %c0_6 = arith.constant 0 : index
    %c0_7 = arith.constant 0 : index
    %3 = vector.load %arg3[%c0_5, %c0_6, %c0_7] : memref<3x128x128xbf16, #tpu.memory_space<vmem>>, vector<1x128x128xbf16>
    %4 = vector.shape_cast %3 : vector<1x128x128xbf16> to vector<128x128xbf16>
    %cst = arith.constant dense<0.000000e+00> : vector<16x128xf32>
    %5 = tpu.matmul %2, %4, %cst {dimension_numbers = #tpu.dot_dimension_numbers<[1], [0], [0], [1], [0, 0, 1, 1], [], []>} : vector<16x128xbf16>, vector<128x128xbf16>, vector<16x128xf32> -> vector<16x128xf32>
    %6 = arith.truncf %5 : vector<16x128xf32> to vector<16x128xbf16>
    %c0_8 = arith.constant 0 : index
    %c0_9 = arith.constant 0 : index
    %c0_10 = arith.constant 0 : index
    %7 = vector.load %arg4[%c0_8, %c0_9, %c0_10] : memref<3x128x2xbf16, #tpu.memory_space<vmem>>, vector<1x128x2xbf16>
    %8 = vector.shape_cast %7 : vector<1x128x2xbf16> to vector<128x2xbf16>
    %cst_11 = arith.constant dense<0.000000e+00> : vector<16x2xf32>
    %9 = tpu.matmul %6, %8, %cst_11 {dimension_numbers = #tpu.dot_dimension_numbers<[1], [0], [0], [1], [0, 0, 1, 1], [], []>} : vector<16x128xbf16>, vector<128x2xbf16>, vector<16x2xf32> -> vector<16x2xf32>
    %c0_12 = arith.constant 0 : index
    %c0_13 = arith.constant 0 : index
    %c0_14 = arith.constant 0 : index
    %10 = vector.load %arg5[%c0_12, %c0_13, %c0_14] : memref<3x2x128xbf16, #tpu.memory_space<vmem>>, vector<1x2x128xbf16>
    %11 = vector.shape_cast %10 : vector<1x2x128xbf16> to vector<2x128xbf16>
    %cst_15 = arith.constant dense<0.000000e+00> : vector<2x16xf32>
    %12 = tpu.matmul %11, %6, %cst_15 {dimension_numbers = #tpu.dot_dimension_numbers<[1], [1], [0], [0], [0, 0, 1, 0], [], []>} : vector<2x128xbf16>, vector<16x128xbf16>, vector<2x16xf32> -> vector<2x16xf32>
    %13 = vector.extract_strided_slice %9 {offsets = [0, 0], sizes = [16, 1], strides = [1, 1]} : vector<16x2xf32> to vector<16x1xf32>
    %14 = vector.extract_strided_slice %12 {offsets = [0, 0], sizes = [1, 16], strides = [1, 1]} : vector<2x16xf32> to vector<1x16xf32>
    %15 = vector.broadcast %13 : vector<16x1xf32> to vector<16x16xf32>
    %16 = vector.broadcast %14 : vector<1x16xf32> to vector<16x16xf32>
    %17 = arith.addf %15, %16 : vector<16x16xf32>
    %c0_16 = arith.constant 0 : index
    %c0_17 = arith.constant 0 : index
    %18 = memref.load %arg6[%c0_16, %c0_17] : memref<3x2xf32, #tpu.memory_space<smem>>
    %19 = vector.broadcast %18 : f32 to vector<16x16xf32>
    %20 = arith.mulf %1, %19 : vector<16x16xf32>
    %21 = arith.addf %17, %20 : vector<16x16xf32>
    %22 = vector.extract_strided_slice %9 {offsets = [0, 1], sizes = [16, 1], strides = [1, 1]} : vector<16x2xf32> to vector<16x1xf32>
    %23 = vector.extract_strided_slice %12 {offsets = [1, 0], sizes = [1, 16], strides = [1, 1]} : vector<2x16xf32> to vector<1x16xf32>
    %24 = vector.broadcast %22 : vector<16x1xf32> to vector<16x16xf32>
    %25 = vector.broadcast %23 : vector<1x16xf32> to vector<16x16xf32>
    %26 = arith.addf %24, %25 : vector<16x16xf32>
    %c0_18 = arith.constant 0 : index
    %c1 = arith.constant 1 : index
    %27 = memref.load %arg6[%c0_18, %c1] : memref<3x2xf32, #tpu.memory_space<smem>>
    %28 = vector.broadcast %27 : f32 to vector<16x16xf32>
    %29 = arith.mulf %1, %28 : vector<16x16xf32>
    %30 = arith.addf %26, %29 : vector<16x16xf32>
    %31 = vector.shape_cast %21 : vector<16x16xf32> to vector<1x16x16xf32>
    %32 = vector.shape_cast %30 : vector<16x16xf32> to vector<1x16x16xf32>
    %33 = tpu.concatenate %31, %32 in 0 : vector<1x16x16xf32>, vector<1x16x16xf32> -> vector<2x16x16xf32>
    %cst_19 = arith.constant 0.000000e+00 : f32
    %34 = vector.broadcast %cst_19 : f32 to vector<2x16x16xf32>
    %35 = arith.cmpf oge, %33, %34 : vector<2x16x16xf32>
    %cst_20 = arith.constant 2.000000e-01 : f32
    %36 = vector.broadcast %cst_20 : f32 to vector<2x16x16xf32>
    %37 = arith.mulf %36, %33 : vector<2x16x16xf32>
    %38 = arith.select %35, %33, %37 : vector<2x16x16xi1>, vector<2x16x16xf32>
    %39 = vector.shape_cast %0 : vector<16x16xf32> to vector<1x16x16xf32>
    %40 = vector.broadcast %39 : vector<1x16x16xf32> to vector<2x16x16xf32>
    %41 = arith.addf %38, %40 : vector<2x16x16xf32>
    %cst_21 = arith.constant dense<0xFF800000> : vector<2x16xf32>
    %42 = vector.multi_reduction <maximumf>, %41, %cst_21 [2] : vector<2x16x16xf32> to vector<2x16xf32>
    %43 = vector.shape_cast %42 : vector<2x16xf32> to vector<2x16x1xf32>
    %44 = vector.broadcast %43 : vector<2x16x1xf32> to vector<2x16x16xf32>
    %45 = arith.subf %41, %44 : vector<2x16x16xf32>
    %46 = math.exp %45 : vector<2x16x16xf32>
    %cst_22 = arith.constant dense<0.000000e+00> : vector<2x16xf32>
    %47 = vector.multi_reduction <add>, %46, %cst_22 [2] : vector<2x16x16xf32> to vector<2x16xf32>
    %48 = vector.shape_cast %47 : vector<2x16xf32> to vector<2x16x1xf32>
    %49 = vector.broadcast %48 : vector<2x16x1xf32> to vector<2x16x16xf32>
    %50 = arith.divf %46, %49 : vector<2x16x16xf32>
    %51 = arith.truncf %50 : vector<2x16x16xf32> to vector<2x16x16xbf16>
    %52 = vector.extract_strided_slice %51 {offsets = [0, 0, 0], sizes = [1, 16, 16], strides = [1, 1, 1]} : vector<2x16x16xbf16> to vector<1x16x16xbf16>
    %53 = vector.shape_cast %52 : vector<1x16x16xbf16> to vector<16x16xbf16>
    %54 = vector.extract_strided_slice %6 {offsets = [0, 0], sizes = [16, 16], strides = [1, 1]} : vector<16x128xbf16> to vector<16x16xbf16>
    %cst_23 = arith.constant dense<0.000000e+00> : vector<16x16xf32>
    %55 = tpu.matmul %53, %54, %cst_23 {dimension_numbers = #tpu.dot_dimension_numbers<[1], [0], [0], [1], [0, 0, 1, 1], [], []>} : vector<16x16xbf16>, vector<16x16xbf16>, vector<16x16xf32> -> vector<16x16xf32>
    %56 = vector.extract_strided_slice %51 {offsets = [1, 0, 0], sizes = [1, 16, 16], strides = [1, 1, 1]} : vector<2x16x16xbf16> to vector<1x16x16xbf16>
    %57 = vector.shape_cast %56 : vector<1x16x16xbf16> to vector<16x16xbf16>
    %58 = vector.extract_strided_slice %6 {offsets = [0, 16], sizes = [16, 16], strides = [1, 1]} : vector<16x128xbf16> to vector<16x16xbf16>
    %cst_24 = arith.constant dense<0.000000e+00> : vector<16x16xf32>
    %59 = tpu.matmul %57, %58, %cst_24 {dimension_numbers = #tpu.dot_dimension_numbers<[1], [0], [0], [1], [0, 0, 1, 1], [], []>} : vector<16x16xbf16>, vector<16x16xbf16>, vector<16x16xf32> -> vector<16x16xf32>
    %cst_25 = arith.constant 0.000000e+00 : f32
    %60 = vector.broadcast %cst_25 : f32 to vector<16x96xf32>
    %61 = tpu.concatenate %55, %59, %60 in 1 : vector<16x16xf32>, vector<16x16xf32>, vector<16x96xf32> -> vector<16x128xf32>
    %c0_26 = arith.constant 0 : index
    %c0_27 = arith.constant 0 : index
    %c0_28 = arith.constant 0 : index
    %62 = vector.load %arg7[%c0_26, %c0_27, %c0_28] : memref<3x1x128xf32, #tpu.memory_space<vmem>>, vector<1x1x128xf32>
    %63 = vector.shape_cast %62 : vector<1x1x128xf32> to vector<1x128xf32>
    %64 = vector.broadcast %63 : vector<1x128xf32> to vector<16x128xf32>
    %65 = arith.addf %61, %64 : vector<16x128xf32>
    %cst_29 = arith.constant 0.000000e+00 : f32
    %66 = vector.broadcast %cst_29 : f32 to vector<16x128xf32>
    %67 = arith.maximumf %65, %66 : vector<16x128xf32>
    %68 = arith.truncf %67 : vector<16x128xf32> to vector<16x128xbf16>
    %c1_30 = arith.constant 1 : index
    %c0_31 = arith.constant 0 : index
    %c0_32 = arith.constant 0 : index
    %69 = vector.load %arg3[%c1_30, %c0_31, %c0_32] : memref<3x128x128xbf16, #tpu.memory_space<vmem>>, vector<1x128x128xbf16>
    %70 = vector.shape_cast %69 : vector<1x128x128xbf16> to vector<128x128xbf16>
    %cst_33 = arith.constant dense<0.000000e+00> : vector<16x128xf32>
    %71 = tpu.matmul %68, %70, %cst_33 {dimension_numbers = #tpu.dot_dimension_numbers<[1], [0], [0], [1], [0, 0, 1, 1], [], []>} : vector<16x128xbf16>, vector<128x128xbf16>, vector<16x128xf32> -> vector<16x128xf32>
    %72 = arith.truncf %71 : vector<16x128xf32> to vector<16x128xbf16>
    %c1_34 = arith.constant 1 : index
    %c0_35 = arith.constant 0 : index
    %c0_36 = arith.constant 0 : index
    %73 = vector.load %arg4[%c1_34, %c0_35, %c0_36] : memref<3x128x2xbf16, #tpu.memory_space<vmem>>, vector<1x128x2xbf16>
    %74 = vector.shape_cast %73 : vector<1x128x2xbf16> to vector<128x2xbf16>
    %cst_37 = arith.constant dense<0.000000e+00> : vector<16x2xf32>
    %75 = tpu.matmul %72, %74, %cst_37 {dimension_numbers = #tpu.dot_dimension_numbers<[1], [0], [0], [1], [0, 0, 1, 1], [], []>} : vector<16x128xbf16>, vector<128x2xbf16>, vector<16x2xf32> -> vector<16x2xf32>
    %c1_38 = arith.constant 1 : index
    %c0_39 = arith.constant 0 : index
    %c0_40 = arith.constant 0 : index
    %76 = vector.load %arg5[%c1_38, %c0_39, %c0_40] : memref<3x2x128xbf16, #tpu.memory_space<vmem>>, vector<1x2x128xbf16>
    %77 = vector.shape_cast %76 : vector<1x2x128xbf16> to vector<2x128xbf16>
    %cst_41 = arith.constant dense<0.000000e+00> : vector<2x16xf32>
    %78 = tpu.matmul %77, %72, %cst_41 {dimension_numbers = #tpu.dot_dimension_numbers<[1], [1], [0], [0], [0, 0, 1, 0], [], []>} : vector<2x128xbf16>, vector<16x128xbf16>, vector<2x16xf32> -> vector<2x16xf32>
    %79 = vector.extract_strided_slice %75 {offsets = [0, 0], sizes = [16, 1], strides = [1, 1]} : vector<16x2xf32> to vector<16x1xf32>
    %80 = vector.extract_strided_slice %78 {offsets = [0, 0], sizes = [1, 16], strides = [1, 1]} : vector<2x16xf32> to vector<1x16xf32>
    %81 = vector.broadcast %79 : vector<16x1xf32> to vector<16x16xf32>
    %82 = vector.broadcast %80 : vector<1x16xf32> to vector<16x16xf32>
    %83 = arith.addf %81, %82 : vector<16x16xf32>
    %c1_42 = arith.constant 1 : index
    %c0_43 = arith.constant 0 : index
    %84 = memref.load %arg6[%c1_42, %c0_43] : memref<3x2xf32, #tpu.memory_space<smem>>
    %85 = vector.broadcast %84 : f32 to vector<16x16xf32>
    %86 = arith.mulf %1, %85 : vector<16x16xf32>
    %87 = arith.addf %83, %86 : vector<16x16xf32>
    %88 = vector.extract_strided_slice %75 {offsets = [0, 1], sizes = [16, 1], strides = [1, 1]} : vector<16x2xf32> to vector<16x1xf32>
    %89 = vector.extract_strided_slice %78 {offsets = [1, 0], sizes = [1, 16], strides = [1, 1]} : vector<2x16xf32> to vector<1x16xf32>
    %90 = vector.broadcast %88 : vector<16x1xf32> to vector<16x16xf32>
    %91 = vector.broadcast %89 : vector<1x16xf32> to vector<16x16xf32>
    %92 = arith.addf %90, %91 : vector<16x16xf32>
    %c1_44 = arith.constant 1 : index
    %c1_45 = arith.constant 1 : index
    %93 = memref.load %arg6[%c1_44, %c1_45] : memref<3x2xf32, #tpu.memory_space<smem>>
    %94 = vector.broadcast %93 : f32 to vector<16x16xf32>
    %95 = arith.mulf %1, %94 : vector<16x16xf32>
    %96 = arith.addf %92, %95 : vector<16x16xf32>
    %97 = vector.shape_cast %87 : vector<16x16xf32> to vector<1x16x16xf32>
    %98 = vector.shape_cast %96 : vector<16x16xf32> to vector<1x16x16xf32>
    %99 = tpu.concatenate %97, %98 in 0 : vector<1x16x16xf32>, vector<1x16x16xf32> -> vector<2x16x16xf32>
    %cst_46 = arith.constant 0.000000e+00 : f32
    %100 = vector.broadcast %cst_46 : f32 to vector<2x16x16xf32>
    %101 = arith.cmpf oge, %99, %100 : vector<2x16x16xf32>
    %cst_47 = arith.constant 2.000000e-01 : f32
    %102 = vector.broadcast %cst_47 : f32 to vector<2x16x16xf32>
    %103 = arith.mulf %102, %99 : vector<2x16x16xf32>
    %104 = arith.select %101, %99, %103 : vector<2x16x16xi1>, vector<2x16x16xf32>
    %105 = vector.shape_cast %0 : vector<16x16xf32> to vector<1x16x16xf32>
    %106 = vector.broadcast %105 : vector<1x16x16xf32> to vector<2x16x16xf32>
    %107 = arith.addf %104, %106 : vector<2x16x16xf32>
    %cst_48 = arith.constant dense<0xFF800000> : vector<2x16xf32>
    %108 = vector.multi_reduction <maximumf>, %107, %cst_48 [2] : vector<2x16x16xf32> to vector<2x16xf32>
    %109 = vector.shape_cast %108 : vector<2x16xf32> to vector<2x16x1xf32>
    %110 = vector.broadcast %109 : vector<2x16x1xf32> to vector<2x16x16xf32>
    %111 = arith.subf %107, %110 : vector<2x16x16xf32>
    %112 = math.exp %111 : vector<2x16x16xf32>
    %cst_49 = arith.constant dense<0.000000e+00> : vector<2x16xf32>
    %113 = vector.multi_reduction <add>, %112, %cst_49 [2] : vector<2x16x16xf32> to vector<2x16xf32>
    %114 = vector.shape_cast %113 : vector<2x16xf32> to vector<2x16x1xf32>
    %115 = vector.broadcast %114 : vector<2x16x1xf32> to vector<2x16x16xf32>
    %116 = arith.divf %112, %115 : vector<2x16x16xf32>
    %117 = arith.truncf %116 : vector<2x16x16xf32> to vector<2x16x16xbf16>
    %118 = vector.extract_strided_slice %117 {offsets = [0, 0, 0], sizes = [1, 16, 16], strides = [1, 1, 1]} : vector<2x16x16xbf16> to vector<1x16x16xbf16>
    %119 = vector.shape_cast %118 : vector<1x16x16xbf16> to vector<16x16xbf16>
    %120 = vector.extract_strided_slice %72 {offsets = [0, 0], sizes = [16, 16], strides = [1, 1]} : vector<16x128xbf16> to vector<16x16xbf16>
    %cst_50 = arith.constant dense<0.000000e+00> : vector<16x16xf32>
    %121 = tpu.matmul %119, %120, %cst_50 {dimension_numbers = #tpu.dot_dimension_numbers<[1], [0], [0], [1], [0, 0, 1, 1], [], []>} : vector<16x16xbf16>, vector<16x16xbf16>, vector<16x16xf32> -> vector<16x16xf32>
    %122 = vector.extract_strided_slice %117 {offsets = [1, 0, 0], sizes = [1, 16, 16], strides = [1, 1, 1]} : vector<2x16x16xbf16> to vector<1x16x16xbf16>
    %123 = vector.shape_cast %122 : vector<1x16x16xbf16> to vector<16x16xbf16>
    %124 = vector.extract_strided_slice %72 {offsets = [0, 16], sizes = [16, 16], strides = [1, 1]} : vector<16x128xbf16> to vector<16x16xbf16>
    %cst_51 = arith.constant dense<0.000000e+00> : vector<16x16xf32>
    %125 = tpu.matmul %123, %124, %cst_51 {dimension_numbers = #tpu.dot_dimension_numbers<[1], [0], [0], [1], [0, 0, 1, 1], [], []>} : vector<16x16xbf16>, vector<16x16xbf16>, vector<16x16xf32> -> vector<16x16xf32>
    %cst_52 = arith.constant 0.000000e+00 : f32
    %126 = vector.broadcast %cst_52 : f32 to vector<16x96xf32>
    %127 = tpu.concatenate %121, %125, %126 in 1 : vector<16x16xf32>, vector<16x16xf32>, vector<16x96xf32> -> vector<16x128xf32>
    %c1_53 = arith.constant 1 : index
    %c0_54 = arith.constant 0 : index
    %c0_55 = arith.constant 0 : index
    %128 = vector.load %arg7[%c1_53, %c0_54, %c0_55] : memref<3x1x128xf32, #tpu.memory_space<vmem>>, vector<1x1x128xf32>
    %129 = vector.shape_cast %128 : vector<1x1x128xf32> to vector<1x128xf32>
    %130 = vector.broadcast %129 : vector<1x128xf32> to vector<16x128xf32>
    %131 = arith.addf %127, %130 : vector<16x128xf32>
    %cst_56 = arith.constant 0.000000e+00 : f32
    %132 = vector.broadcast %cst_56 : f32 to vector<16x128xf32>
    %133 = arith.maximumf %131, %132 : vector<16x128xf32>
    %134 = arith.truncf %133 : vector<16x128xf32> to vector<16x128xbf16>
    %c2 = arith.constant 2 : index
    %c0_57 = arith.constant 0 : index
    %c0_58 = arith.constant 0 : index
    %135 = vector.load %arg3[%c2, %c0_57, %c0_58] : memref<3x128x128xbf16, #tpu.memory_space<vmem>>, vector<1x128x128xbf16>
    %136 = vector.shape_cast %135 : vector<1x128x128xbf16> to vector<128x128xbf16>
    %cst_59 = arith.constant dense<0.000000e+00> : vector<16x128xf32>
    %137 = tpu.matmul %134, %136, %cst_59 {dimension_numbers = #tpu.dot_dimension_numbers<[1], [0], [0], [1], [0, 0, 1, 1], [], []>} : vector<16x128xbf16>, vector<128x128xbf16>, vector<16x128xf32> -> vector<16x128xf32>
    %138 = arith.truncf %137 : vector<16x128xf32> to vector<16x128xbf16>
    %c2_60 = arith.constant 2 : index
    %c0_61 = arith.constant 0 : index
    %c0_62 = arith.constant 0 : index
    %139 = vector.load %arg4[%c2_60, %c0_61, %c0_62] : memref<3x128x2xbf16, #tpu.memory_space<vmem>>, vector<1x128x2xbf16>
    %140 = vector.shape_cast %139 : vector<1x128x2xbf16> to vector<128x2xbf16>
    %cst_63 = arith.constant dense<0.000000e+00> : vector<16x2xf32>
    %141 = tpu.matmul %138, %140, %cst_63 {dimension_numbers = #tpu.dot_dimension_numbers<[1], [0], [0], [1], [0, 0, 1, 1], [], []>} : vector<16x128xbf16>, vector<128x2xbf16>, vector<16x2xf32> -> vector<16x2xf32>
    %c2_64 = arith.constant 2 : index
    %c0_65 = arith.constant 0 : index
    %c0_66 = arith.constant 0 : index
    %142 = vector.load %arg5[%c2_64, %c0_65, %c0_66] : memref<3x2x128xbf16, #tpu.memory_space<vmem>>, vector<1x2x128xbf16>
    %143 = vector.shape_cast %142 : vector<1x2x128xbf16> to vector<2x128xbf16>
    %cst_67 = arith.constant dense<0.000000e+00> : vector<2x16xf32>
    %144 = tpu.matmul %143, %138, %cst_67 {dimension_numbers = #tpu.dot_dimension_numbers<[1], [1], [0], [0], [0, 0, 1, 0], [], []>} : vector<2x128xbf16>, vector<16x128xbf16>, vector<2x16xf32> -> vector<2x16xf32>
    %145 = vector.extract_strided_slice %141 {offsets = [0, 0], sizes = [16, 1], strides = [1, 1]} : vector<16x2xf32> to vector<16x1xf32>
    %146 = vector.extract_strided_slice %144 {offsets = [0, 0], sizes = [1, 16], strides = [1, 1]} : vector<2x16xf32> to vector<1x16xf32>
    %147 = vector.broadcast %145 : vector<16x1xf32> to vector<16x16xf32>
    %148 = vector.broadcast %146 : vector<1x16xf32> to vector<16x16xf32>
    %149 = arith.addf %147, %148 : vector<16x16xf32>
    %c2_68 = arith.constant 2 : index
    %c0_69 = arith.constant 0 : index
    %150 = memref.load %arg6[%c2_68, %c0_69] : memref<3x2xf32, #tpu.memory_space<smem>>
    %151 = vector.broadcast %150 : f32 to vector<16x16xf32>
    %152 = arith.mulf %1, %151 : vector<16x16xf32>
    %153 = arith.addf %149, %152 : vector<16x16xf32>
    %154 = vector.extract_strided_slice %141 {offsets = [0, 1], sizes = [16, 1], strides = [1, 1]} : vector<16x2xf32> to vector<16x1xf32>
    %155 = vector.extract_strided_slice %144 {offsets = [1, 0], sizes = [1, 16], strides = [1, 1]} : vector<2x16xf32> to vector<1x16xf32>
    %156 = vector.broadcast %154 : vector<16x1xf32> to vector<16x16xf32>
    %157 = vector.broadcast %155 : vector<1x16xf32> to vector<16x16xf32>
    %158 = arith.addf %156, %157 : vector<16x16xf32>
    %c2_70 = arith.constant 2 : index
    %c1_71 = arith.constant 1 : index
    %159 = memref.load %arg6[%c2_70, %c1_71] : memref<3x2xf32, #tpu.memory_space<smem>>
    %160 = vector.broadcast %159 : f32 to vector<16x16xf32>
    %161 = arith.mulf %1, %160 : vector<16x16xf32>
    %162 = arith.addf %158, %161 : vector<16x16xf32>
    %163 = vector.shape_cast %153 : vector<16x16xf32> to vector<1x16x16xf32>
    %164 = vector.shape_cast %162 : vector<16x16xf32> to vector<1x16x16xf32>
    %165 = tpu.concatenate %163, %164 in 0 : vector<1x16x16xf32>, vector<1x16x16xf32> -> vector<2x16x16xf32>
    %cst_72 = arith.constant 0.000000e+00 : f32
    %166 = vector.broadcast %cst_72 : f32 to vector<2x16x16xf32>
    %167 = arith.cmpf oge, %165, %166 : vector<2x16x16xf32>
    %cst_73 = arith.constant 2.000000e-01 : f32
    %168 = vector.broadcast %cst_73 : f32 to vector<2x16x16xf32>
    %169 = arith.mulf %168, %165 : vector<2x16x16xf32>
    %170 = arith.select %167, %165, %169 : vector<2x16x16xi1>, vector<2x16x16xf32>
    %171 = vector.shape_cast %0 : vector<16x16xf32> to vector<1x16x16xf32>
    %172 = vector.broadcast %171 : vector<1x16x16xf32> to vector<2x16x16xf32>
    %173 = arith.addf %170, %172 : vector<2x16x16xf32>
    %cst_74 = arith.constant dense<0xFF800000> : vector<2x16xf32>
    %174 = vector.multi_reduction <maximumf>, %173, %cst_74 [2] : vector<2x16x16xf32> to vector<2x16xf32>
    %175 = vector.shape_cast %174 : vector<2x16xf32> to vector<2x16x1xf32>
    %176 = vector.broadcast %175 : vector<2x16x1xf32> to vector<2x16x16xf32>
    %177 = arith.subf %173, %176 : vector<2x16x16xf32>
    %178 = math.exp %177 : vector<2x16x16xf32>
    %cst_75 = arith.constant dense<0.000000e+00> : vector<2x16xf32>
    %179 = vector.multi_reduction <add>, %178, %cst_75 [2] : vector<2x16x16xf32> to vector<2x16xf32>
    %180 = vector.shape_cast %179 : vector<2x16xf32> to vector<2x16x1xf32>
    %181 = vector.broadcast %180 : vector<2x16x1xf32> to vector<2x16x16xf32>
    %182 = arith.divf %178, %181 : vector<2x16x16xf32>
    %183 = arith.truncf %182 : vector<2x16x16xf32> to vector<2x16x16xbf16>
    %184 = vector.extract_strided_slice %183 {offsets = [0, 0, 0], sizes = [1, 16, 16], strides = [1, 1, 1]} : vector<2x16x16xbf16> to vector<1x16x16xbf16>
    %185 = vector.shape_cast %184 : vector<1x16x16xbf16> to vector<16x16xbf16>
    %186 = vector.extract_strided_slice %138 {offsets = [0, 0], sizes = [16, 16], strides = [1, 1]} : vector<16x128xbf16> to vector<16x16xbf16>
    %cst_76 = arith.constant dense<0.000000e+00> : vector<16x16xf32>
    %187 = tpu.matmul %185, %186, %cst_76 {dimension_numbers = #tpu.dot_dimension_numbers<[1], [0], [0], [1], [0, 0, 1, 1], [], []>} : vector<16x16xbf16>, vector<16x16xbf16>, vector<16x16xf32> -> vector<16x16xf32>
    %188 = vector.extract_strided_slice %183 {offsets = [1, 0, 0], sizes = [1, 16, 16], strides = [1, 1, 1]} : vector<2x16x16xbf16> to vector<1x16x16xbf16>
    %189 = vector.shape_cast %188 : vector<1x16x16xbf16> to vector<16x16xbf16>
    %190 = vector.extract_strided_slice %138 {offsets = [0, 16], sizes = [16, 16], strides = [1, 1]} : vector<16x128xbf16> to vector<16x16xbf16>
    %cst_77 = arith.constant dense<0.000000e+00> : vector<16x16xf32>
    %191 = tpu.matmul %189, %190, %cst_77 {dimension_numbers = #tpu.dot_dimension_numbers<[1], [0], [0], [1], [0, 0, 1, 1], [], []>} : vector<16x16xbf16>, vector<16x16xbf16>, vector<16x16xf32> -> vector<16x16xf32>
    %cst_78 = arith.constant 0.000000e+00 : f32
    %192 = vector.broadcast %cst_78 : f32 to vector<16x96xf32>
    %193 = tpu.concatenate %187, %191, %192 in 1 : vector<16x16xf32>, vector<16x16xf32>, vector<16x96xf32> -> vector<16x128xf32>
    %c2_79 = arith.constant 2 : index
    %c0_80 = arith.constant 0 : index
    %c0_81 = arith.constant 0 : index
    %194 = vector.load %arg7[%c2_79, %c0_80, %c0_81] : memref<3x1x128xf32, #tpu.memory_space<vmem>>, vector<1x1x128xf32>
    %195 = vector.shape_cast %194 : vector<1x1x128xf32> to vector<1x128xf32>
    %196 = vector.broadcast %195 : vector<1x128xf32> to vector<16x128xf32>
    %197 = arith.addf %193, %196 : vector<16x128xf32>
    %cst_82 = arith.constant 0.000000e+00 : f32
    %198 = vector.broadcast %cst_82 : f32 to vector<16x128xf32>
    %199 = arith.maximumf %197, %198 : vector<16x128xf32>
    %c0_83 = arith.constant 0 : index
    %c0_84 = arith.constant 0 : index
    %200 = vector.load %arg8[%c0_83, %c0_84] : memref<2x16xf32, #tpu.memory_space<vmem>>, vector<2x16xf32>
    %cst_85 = arith.constant dense<0.000000e+00> : vector<2x128xf32>
    %201 = tpu.matmul %200, %199, %cst_85 {dimension_numbers = #tpu.dot_dimension_numbers<[1], [0], [0], [1], [0, 0, 1, 1], [], []>} : vector<2x16xf32>, vector<16x128xf32>, vector<2x128xf32> -> vector<2x128xf32>
    %202 = arith.truncf %201 : vector<2x128xf32> to vector<2x128xbf16>
    %c0_86 = arith.constant 0 : index
    %c0_87 = arith.constant 0 : index
    %203 = vector.load %arg9[%c0_86, %c0_87] : memref<128x128xbf16, #tpu.memory_space<vmem>>, vector<128x128xbf16>
    %cst_88 = arith.constant dense<0.000000e+00> : vector<2x128xf32>
    %204 = tpu.matmul %202, %203, %cst_88 {dimension_numbers = #tpu.dot_dimension_numbers<[1], [0], [0], [1], [0, 0, 1, 1], [], []>} : vector<2x128xbf16>, vector<128x128xbf16>, vector<2x128xf32> -> vector<2x128xf32>
    %c0_89 = arith.constant 0 : index
    %c0_90 = arith.constant 0 : index
    %205 = vector.load %arg10[%c0_89, %c0_90] : memref<1x128xf32, #tpu.memory_space<vmem>>, vector<1x128xf32>
    %206 = vector.broadcast %205 : vector<1x128xf32> to vector<2x128xf32>
    %207 = arith.addf %204, %206 : vector<2x128xf32>
    %208 = math.tanh %207 : vector<2x128xf32>
    %c0_91 = arith.constant 0 : index
    %c0_92 = arith.constant 0 : index
    %209 = vector.load %arg11[%c0_91, %c0_92] : memref<2x128xf32, #tpu.memory_space<vmem>>, vector<2x128xf32>
    tpu.vector_store %arg11[%c0_91, %c0_92], %208 {strides = array<i32>} : memref<2x128xf32, #tpu.memory_space<vmem>>, vector<2x128xf32>,
    return
  }
}

</mosaic_0001>

<bundles_post_ra>
// kernel: gat_policy_forward.1
= control target key start
LH: loop header
LB: loop body
LE: loop exit
PB: predicated region body
PF: predicated region fallthrough
CT: control target
= control target key end

     0   :  { %16 = vsyncpa [#allocation5], 0  ;;  %s2919_s0 = inlined_call_operand.vmem [shape: bf16[16,128], index: 0, kind: input, shape index: {}]   ;;  %s2920_s1 = inlined_call_operand.vmem [shape: f32[16,16], index: 1, kind: input, shape index: {}]   ;;  %s2921_s2 = inlined_call_operand.vmem [shape: f32[16,16], index: 2, kind: input, shape index: {}]   ;;  %s2922_s3 = inlined_call_operand.vmem [shape: bf16[3,128,128], index: 3, kind: input, shape index: {}]   ;;  %s2923_s4 = inlined_call_operand.vmem [shape: bf16[3,128,2], index: 4, kind: input, shape index: {}]   ;;  %s2924_s5 = inlined_call_operand.vmem [shape: bf16[3,2,128], index: 5, kind: input, shape index: {}]   ;;  %s2925_s6 = inlined_call_operand.vmem [shape: f32[3,2], index: 6, kind: input, shape index: {}]   ;;  %s2926_s7 = inlined_call_operand.vmem [shape: f32[3,1,128], index: 7, kind: input, shape index: {}]   ;;  %s2927_s8 = inlined_call_operand.hbm [shape: f32[2,16], index: 8, kind: input, shape index: {}]   ;;  %s2928_s9 = inlined_call_operand.hbm [shape: bf16[128,128], index: 9, kind: input, shape index: {}]   ;;  %s2929_s10 = inlined_call_operand.hbm [shape: f32[1,128], index: 10, kind: input, shape index: {}]   ;;  %s2930_s11 = inlined_call_operand.hbm [shape: f32[2,128], index: 11, kind: output, shape index: {}]  }
   0x1   :  { %17 = vsyncpa [#allocation3], 0 }
   0x2   :  { %18 = vsyncpa [#allocation8], 0 }
   0x3   :  { %19 = vsyncpa [#allocation4], 0  ;;  %s2398_s17 = smov [#allocation7]   ;;  %s38_s21 = sshll.u32 %s2925_s6, 4  ;;  %s39_s21 = int_to_ptr.vmem [resolvable:$true] %s38_s21 }
   0x4   :  { %s59_s18 = sshll.u32 %s2398_s17, 4  ;;  %s2290_s24 = scalar_lea.hbm %s2928_s9, 1024  ;;  %s60_s18 = int_to_ptr.vmem [resolvable:$true] %s59_s18 }
   0x5   :  { %p2291_p0 = scmp.ne.s32.totalorder %s2928_s9, %s2290_s24  ;;  %p2294_p1 = scmp.lt.u32.totalorder %s2290_s24, %s2928_s9 }
   0x7   :  { %p2296_p2 = pnand %p2294_p1, %p2291_p0 }
   0x9   :  { %2299 = shalt.err (!%p2296_p2)
}
   0xa   :  { %s2300_s29 = scalar_lea.vmem %s60_s18, 1024  ;;  %p2305_p4 = scmp.lt.s32.totalorder %s60_s18, %s60_s18 }
   0xb   :  { %p2301_p3 = scmp.ne.s32.totalorder %s60_s18, %s2300_s29  ;;  %p2306_p5 = scmp.lt.s32.totalorder %s2300_s29, %s2300_s29 }
   0xd   :  { %p2307_p6 = por %p2306_p5, %p2305_p4 }
   0xf   :  { %p2308_p7 = pnand %p2307_p6, %p2301_p3 }
  0x11   :  { %2311 = shalt.err (!%p2308_p7)
}
  0x12   :  { %s2399_s6 = smov 64   ;;  %s2400_s30 = smov 4  }
  0x13   :  { %65 = dma.hbm_to_vmem [thread:$0]  %s2928_s9, 1024, %s60_s18, [#allocation8], %s2399_s6, %s2399_s6, %s2400_s30  }
  0x14   :  { %s2312_s14 = scalar_lea.vmem %s39_s21, 64  ;;  %p2317_p9 = scmp.lt.s32.totalorder %s39_s21, %s39_s21 }
  0x15   :  { %p2313_p8 = scmp.ne.s32.totalorder %s39_s21, %s2312_s14  ;;  %p2318_p10 = scmp.lt.s32.totalorder %s2312_s14, %s2312_s14 }
  0x17   :  { %p2319_p11 = por %p2318_p10, %p2317_p9 }
  0x19   :  { %p2320_p12 = pnand %p2319_p11, %p2313_p8 }
  0x1b   :  { %2323 = shalt.err (!%p2320_p12)
}
  0x1c   :  { %s2401_s15 = smov [#allocation2]   ;;  %s2402_s16 = smov [#allocation6]  }
  0x1d   :  { %41 = dma.vmem_to_smem %s39_s21, 64, %s2401_s15, [#allocation5]  }
  0x1e   :  { %s50_s17 = sshll.u32 %s2402_s16, 4  ;;  %s2403_s19 = smov [#allocation9]   ;;  %s51_s17 = int_to_ptr.vmem [resolvable:$true] %s50_s17 }
  0x1f   :  { %s72_s20 = sshll.u32 %s2403_s19, 4  ;;  %s2324_s9 = scalar_lea.hbm %s2927_s8, 32  ;;  %s73_s20 = int_to_ptr.vmem [resolvable:$true] %s72_s20 }
  0x20   :  { %p2325_p13 = scmp.ne.s32.totalorder %s2927_s8, %s2324_s9  ;;  %p2328_p0 = scmp.lt.u32.totalorder %s2324_s9, %s2927_s8 }
  0x22   :  { %p2330_p1 = pnand %p2328_p0, %p2325_p13 }
  0x24   :  { %2333 = shalt.err (!%p2330_p1)
}
  0x25   :  { %s2334_s21 = scalar_lea.vmem %s51_s17, 32  ;;  %p2339_p3 = scmp.lt.s32.totalorder %s51_s17, %s51_s17 }
  0x26   :  { %p2335_p2 = scmp.ne.s32.totalorder %s51_s17, %s2334_s21  ;;  %p2340_p4 = scmp.lt.s32.totalorder %s2334_s21, %s2334_s21 }
  0x28   :  { %p2341_p5 = por %p2340_p4, %p2339_p3 }
  0x2a   :  { %p2342_p6 = pnand %p2341_p5, %p2335_p2 }
  0x2c   :  { %2345 = shalt.err (!%p2342_p6)
}
  0x2d   :  { %53 = dma.hbm_to_vmem [thread:$0]  %s2927_s8, 32, %s51_s17, [#allocation3]  }
  0x2e   :  { %s2346_s30 = scalar_lea.hbm %s2929_s10, 16 }
  0x2f   :  { %p2347_p7 = scmp.ne.s32.totalorder %s2929_s10, %s2346_s30  ;;  %p2350_p8 = scmp.lt.u32.totalorder %s2346_s30, %s2929_s10 }
  0x31   :  { %p2352_p9 = pnand %p2350_p8, %p2347_p7 }
  0x33   :  { %2355 = shalt.err (!%p2352_p9)
}
  0x34   :  { %s2356_s16 = scalar_lea.vmem %s73_s20, 16  ;;  %s2360_s19 = scalar_lea.vmem %s73_s20, 32 }
  0x35   :  { %p2357_p10 = scmp.ne.s32.totalorder %s73_s20, %s2356_s16  ;;  %p2361_p11 = scmp.lt.s32.totalorder %s73_s20, %s73_s20 }
  0x36   :  { %p2362_p12 = scmp.lt.s32.totalorder %s2360_s19, %s2356_s16 }
  0x38   :  { %p2363_p13 = por %p2362_p12, %p2361_p11 }
  0x3a   :  { %p2364_p0 = pnand %p2363_p13, %p2357_p10 }
  0x3c   :  { %2367 = shalt.err (!%p2364_p0)
}
  0x3d   :  { %75 = dma.hbm_to_vmem [thread:$0]  %s2929_s10, 16, %s73_s20, [#allocation8]  }
  0x3e   :  { %2390 = dma.done.wait [#allocation5], 64  }
  0x3f   :  { %2391 = vsyncadd [#allocation5], 4294967232 }
  0x40   :  { %2392 = dma.done.wait [#allocation3], 32  }
  0x41   :  { %2393 = vsyncadd [#allocation3], 4294967264 }
  0x42   :  { %2394 = dma.done.wait [#allocation8], 1040  }
  0x43   :  { %2395 = vsyncadd [#allocation8], 4294966256 }
  0x44   :  { %88 = sfence }
  0x45   :  { %v2183_v0 = vld [vmem:[%s2922_s3] sm:$0xff]   ;;  %v2404_v1 = vmov 0.0   ;;  %v2184_v2 = vld [vmem:[%s2922_s3 + $0x8] sm:$0xff]   ;;  %vm2405_vm0 = vmmov 0   ;;  %v2185_v3 = vld [vmem:[%s2922_s3 + $0x10] sm:$0xff]   ;;  %v2406_v18 = vmov 1   ;;  %v364_v34 = vlaneseq }
  0x46   :  { %1957 = vmatprep.subr.bf16.mxu0 %v2404_v1  ;;  %1977 = vmatprep.subr.bf16.mxu1 %v2404_v1  ;;  %v2192_v4 = vld [vmem:[%s2923_s4] sm:$0xff]   ;;  %v2186_v5 = vld [vmem:[%s2922_s3 + $0x18] sm:$0xff]   ;;  %v2193_v6 = vld [vmem:[%s2923_s4 + $0x8] sm:$0xff]   ;;  %v2407_v19 = vmov 0   ;;  %s1749_s29 = sld [smem:[#allocation2 + $0x1]]  ;;  %s370_s6 = sld [smem:[#allocation2]] }
  0x47   :  { %1958 = vmatpush3.bf16.msra.mxu0 %v2183_v0  ;;  %1973 = vmatprep.mubr.msk.bf16.mxu0 %vm2405_vm0, %v2404_v1  ;;  %v2187_v7 = vld [vmem:[%s2922_s3 + $0x20] sm:$0xff]   ;;  %v2194_v8 = vld [vmem:[%s2923_s4 + $0x10] sm:$0xff]   ;;  %v2188_v9 = vld [vmem:[%s2922_s3 + $0x28] sm:$0xff]   ;;  %v365_v35 = vshrl.u32 %v364_v34, 7  ;;  %vm412_vm2 = vcmask 130048   ;;  %s2409_s14 = smov 16  }
  0x48   :  { %1959 = vmatprep.subr.bf16.mxu0 %v2404_v1  ;;  %1993 = vmatprep.mubr.msk.bf16.mxu1 %vm2405_vm0, %v2404_v1  ;;  %v2195_v10 = vld [vmem:[%s2923_s4 + $0x18] sm:$0xff]   ;;  %v2189_v11 = vld [vmem:[%s2922_s3 + $0x30] sm:$0xff]   ;;  %v2196_v12 = vld [vmem:[%s2923_s4 + $0x20] sm:$0xff]   ;;  %vm561_vm6 = vcmask 261120   ;;  %s1803_s27 = sld [smem:[#allocation2 + $0x81]]  ;;  %s1857_s8 = sld [smem:[#allocation2 + $0x100]] }
  0x49   :  { %1978 = vmatpush3.bf16.msra.mxu1 %v2192_v4  ;;  %v2190_v13 = vld [vmem:[%s2922_s3 + $0x38] sm:$0xff]   ;;  %v2197_v14 = vld [vmem:[%s2923_s4 + $0x28] sm:$0xff]   ;;  %v2191_v15 = vld [vmem:[%s2919_s0] sm:$0xff]   ;;  %2176 = vset.pattern.permute.xlu1 %v2406_v18  ;;  %v2603_v36 = vsub.s32 0, %v365_v35  ;;  %v2605_v37 = vsub.s32 1, %v365_v35  ;;  %s1802_s0 = sld [smem:[#allocation2 + $0x80]] }
  0x4a   :  { %1979 = vmatprep.subr.bf16.mxu1 %v2404_v1  ;;  %v2198_v16 = vld [vmem:[%s2923_s4 + $0x30] sm:$0xff]   ;;  %v2199_v17 = vld [vmem:[%s2923_s4 + $0x38] sm:$0xff]   ;;  %2175 = vset.pattern.permute.xlu0 %v2407_v19  ;;  %v313_v25 = vld [vmem:[%s2924_s5] sm:$0x1] }
  0x4b   :  { %1960 = vmatpush3.bf16.msra.mxu0 %v2184_v2  ;;  %v2610_v39 = vld [vmem:[%s2921_s2] sm:$0xff]  ;;  %v2619_v47 = vld [vmem:[%s2921_s2 + $0x8] sm:$0xff] }
  0x4c   :  { %1961 = vmatprep.subr.bf16.mxu0 %v2404_v1  ;;  %v391_v38 = vstv %s1749_s29  ;;  %v371_v40 = vstv %s370_s6  ;;  %v2626_v60 = vld [vmem:[%s2920_s1] sm:$0xff] }
  0x4d   :  { %1980 = vmatpush3.bf16.msra.mxu1 %v2193_v6  ;;  %v392_v43 = vmul.f32 %v391_v38, %v2610_v39  ;;  %v372_v44 = vmul.f32 %v371_v40, %v2610_v39  ;;  %v393_v52 = vmul.f32 %v391_v38, %v2619_v47  ;;  %v373_v53 = vmul.f32 %v371_v40, %v2619_v47 }
  0x4e   :  { %1981 = vmatprep.subr.bf16.mxu1 %v2404_v1 }
  0x4f   :  { %1962 = vmatpush3.bf16.msra.mxu0 %v2185_v3  ;;  %v2632_v3 = vld [vmem:[%s2920_s1 + $0x8] sm:$0xff]  ;;  %s2408_s1 = smov 112  }
  0x50   :  { %1963 = vmatprep.subr.bf16.mxu0 %v2404_v1 }
  0x51   :  { %1982 = vmatpush3.bf16.msra.mxu1 %v2194_v8 }
  0x52   :  { %1983 = vmatprep.subr.bf16.mxu1 %v2404_v1 }
  0x53   :  { %1964 = vmatpush3.bf16.msra.mxu0 %v2186_v5 }
  0x54   :  { %1965 = vmatprep.subr.bf16.mxu0 %v2404_v1 }
  0x55   :  { %1984 = vmatpush3.bf16.msra.mxu1 %v2195_v10 }
  0x56   :  { %1985 = vmatprep.subr.bf16.mxu1 %v2404_v1 }
  0x57   :  { %1966 = vmatpush3.bf16.msra.mxu0 %v2187_v7 }
  0x58   :  { %1967 = vmatprep.subr.bf16.mxu0 %v2404_v1 }
  0x59   :  { %1986 = vmatpush3.bf16.msra.mxu1 %v2196_v12 }
  0x5a   :  { %1987 = vmatprep.subr.bf16.mxu1 %v2404_v1 }
  0x5b   :  { %1968 = vmatpush3.bf16.msra.mxu0 %v2188_v9 }
  0x5c   :  { %1969 = vmatprep.subr.bf16.mxu0 %v2404_v1 }
  0x5d   :  { %1988 = vmatpush3.bf16.msra.mxu1 %v2197_v14 }
  0x5e   :  { %1989 = vmatprep.subr.bf16.mxu1 %v2404_v1 }
  0x5f   :  { %1970 = vmatpush3.bf16.msra.mxu0 %v2189_v11 }
  0x60   :  { %1971 = vmatprep.subr.bf16.mxu0 %v2404_v1 }
  0x61   :  { %1990 = vmatpush3.bf16.msra.mxu1 %v2198_v16 }
  0x62   :  { %1991 = vmatprep.subr.bf16.mxu1 %v2404_v1 }
  0x63   :  { %1972 = vmatpush3.bf16.msra.mxu0 %v2190_v13 }
  0x64   :  { %2035 = vmatprep.subr.bf16.mxu0 %v2404_v1 }
  0x65   :  { %1992 = vmatpush3.bf16.msra.mxu1 %v2199_v17 }
  0x66   :  { %1974 = vmatmul.mubr.bf16.vlgmr.msra.gmra.mrb[0].mxu0 %v2191_v15  ;;  %1997 = vmatprep.subr.bf16.mxu1 %v2404_v1 }
  0x67   :  { %2051 = vmatprep.mubr.msk.bf16.mxu0 %vm2405_vm0, %v2404_v1 }
 0x139   :  { %v200_v20 = vpop.f32.mrb[0].mxu0 }
 0x13a   :  { %v1975_v21 = vpop.f32.mrb[1].mxu0 }
 0x13b   :  { %v203_v22 = vpop.f32.mrb[2].mxu0 }
 0x13c   :  { %v2588_v23 = vpack.c.bf16 %v203_v22, %v200_v20  ;;  %v1976_v24 = vpop.f32.mrb[3].mxu0 }
 0x13e   :  { %1994 = vmatmul.mubr.bf16.vlgmr.msra.gmra.mrb[0].mxu1 %v2588_v23 }
 0x13f   :  { %1998 = vmatpush3.bf16.xpose.msra.mxu1 %v2588_v23  ;;  %1999 = vmatprep.mubr.msk.bf16.mxu1 %vm2405_vm0, %v2404_v1 }
 0x140   :  { %2003 = vmatprep.subr.bf16.mxu1 %v2404_v1 }
 0x146   :  { %2000 = vmatmul.mubr.bf16.vlgmr.msra.gmra.mrb[4].mxu1 %v313_v25 }
 0x147   :  { %2004 = vmatpush3.bf16.msra.mxu1 %v2588_v23  ;;  %2005 = vmatprep.mubr.msk.bf16.mxu1 %vm2405_vm0, %v2404_v1 }
 0x148   :  { %2009 = vmatprep.subr.bf16.mxu1 %v2404_v1 }
 0x211   :  { %v306_v26 = vpop.f32.mrb[0].mxu1 }
 0x212   :  { %377 = vperm.xlu1 %2176, %v306_v26   ;;  %356 = vperm.xlu0 %2175, %v306_v26   ;;  %v1995_v27 = vpop.f32.mrb[1].mxu1 }
 0x213   :  { %v309_v28 = vpop.f32.mrb[2].mxu1 }
 0x214   :  { %v1996_v29 = vpop.f32.mrb[3].mxu1 }
 0x216   :  { %381 = vperm.xlu1 %2176, %v309_v28   ;;  %361 = vperm.xlu0 %2175, %v309_v28  }
 0x219   :  { %v348_v30 = vpop.f32.mrb[4].mxu1 }
 0x21a   :  { %v2001_v31 = vpop.f32.mrb[5].mxu1  ;;  %2177 = vset.pattern.permute.xlu0 %v2406_v18  ;;  %v367_v41 = vrot.slane %v348_v30, %v2603_v36  ;;  %v387_v42 = vrot.slane %v348_v30, %v2605_v37 }
 0x21b   :  { %v351_v32 = vpop.f32.mrb[6].mxu1 }
 0x21c   :  { %v2002_v33 = vpop.f32.mrb[7].mxu1 }
 0x291   :  { %v378_v45 = vpop.permute.xlu1 %377  ;;  %v357_v46 = vpop.permute.xlu0 %356 }
 0x292   :  { %v388_v48 = vadd.f32 %v387_v42, %v378_v45  ;;  %v368_v49 = vadd.f32 %v367_v41, %v357_v46 }
 0x294   :  { %v394_v50 = vadd.f32 %v392_v43, %v388_v48  ;;  %v374_v51 = vadd.f32 %v372_v44, %v368_v49 }
 0x295   :  { %v382_v54 = vpop.permute.xlu1 %381  ;;  %v362_v55 = vpop.permute.xlu0 %361 }
 0x296   :  { %v402_v56 = vmul.f32 0.2, %v394_v50  ;;  %v400_v57 = vmul.f32 0.2, %v374_v51  ;;  %v389_v58 = vadd.f32 %v387_v42, %v382_v54  ;;  %v369_v59 = vadd.f32 %v367_v41, %v362_v55 }
 0x297   :  { %vm396_vm1 = vcmp.ge.f32.partialorder %v374_v51, 0.0  ;;  %vm398_vm3 = vcmp.ge.f32.partialorder %v394_v50, 0.0 }
 0x298   :  { %v395_v61 = vadd.f32 %v393_v52, %v389_v58  ;;  %v375_v62 = vadd.f32 %v373_v53, %v369_v59  ;;  %v404_v63 = vsel %vm396_vm1, %v374_v51, %v400_v57  ;;  %v406_v0 = vsel %vm398_vm3, %v394_v50, %v402_v56  ;;  %v2200_v56 = vld [vmem:[%s2922_s3 + $0x40] sm:$0xff]   ;;  %v2201_v57 = vld [vmem:[%s2922_s3 + $0x48] sm:$0xff]   ;;  %v2202_v58 = vld [vmem:[%s2922_s3 + $0x50] sm:$0xff]  }
 0x299   :  { %v408_v2 = vadd.f32 %v404_v63, %v2626_v60  ;;  %v410_v7 = vadd.f32 %v406_v0, %v2626_v60  ;;  %v2203_v59 = vld [vmem:[%s2922_s3 + $0x58] sm:$0xff]   ;;  %v2206_v63 = vld [vmem:[%s2922_s3 + $0x70] sm:$0xff]  }
 0x29a   :  { %v403_v4 = vmul.f32 0.2, %v395_v61  ;;  %v401_v5 = vmul.f32 0.2, %v375_v62  ;;  %vm397_vm4 = vcmp.ge.f32.partialorder %v375_v62, 0.0  ;;  %vm399_vm5 = vcmp.ge.f32.partialorder %v395_v61, 0.0 }
 0x29b   :  { %v413_v6 = vsel %vm412_vm2, %v408_v2, -inf  ;;  %v419_v12 = vsel %vm412_vm2, %v410_v7, -inf }
 0x29c   :  { %414 = vmax.xlane.f32.xlu0 %v413_v6  ;;  %v405_v8 = vsel %vm397_vm4, %v375_v62, %v401_v5  ;;  %v407_v9 = vsel %vm399_vm5, %v395_v61, %v403_v4  ;;  %v2204_v61 = vld [vmem:[%s2922_s3 + $0x60] sm:$0xff]   ;;  %v2205_v62 = vld [vmem:[%s2922_s3 + $0x68] sm:$0xff]   ;;  %v2207_v5 = vld [vmem:[%s2922_s3 + $0x78] sm:$0xff]  }
 0x29d   :  { %v409_v10 = vadd.f32 %v405_v8, %v2632_v3  ;;  %v411_v13 = vadd.f32 %v407_v9, %v2632_v3  ;;  %v2209_v9 = vld [vmem:[%s2923_s4 + $0x48] sm:$0xff]  }
 0x29f   :  { %v416_v11 = vsel %vm412_vm2, %v409_v10, -inf  ;;  %v422_v14 = vsel %vm412_vm2, %v411_v13, -inf }
 0x2a0   :  { %417 = vmax.xlane.f32.xlu1 %v416_v11  ;;  %420 = vmax.xlane.f32.xlu0 %v419_v12 }
 0x2a4   :  { %423 = vmax.xlane.f32.xlu0 %v422_v14  ;;  %v2211_v14 = vld [vmem:[%s2923_s4 + $0x58] sm:$0xff]  }
 0x329   :  { %v415_v15 = vpop.xlane.xlu0 %414 }
 0x32a   :  { %v425_v16 = vsub.f32 %v408_v2, %v415_v15  ;;  %v2212_v15 = vld [vmem:[%s2923_s4 + $0x60] sm:$0xff]  }
 0x32c   :  { %v429_v17 = vmul.f32 1.442695, %v425_v16  ;;  %v2213_v16 = vld [vmem:[%s2923_s4 + $0x68] sm:$0xff]  }
 0x32d   :  { %v418_v20 = vpop.xlane.xlu1 %417  ;;  %v421_v21 = vpop.xlane.xlu0 %420 }
 0x32e   :  { %2240 = vpow2.f32 %v429_v17  ;;  %v426_v22 = vsub.f32 %v409_v10, %v418_v20  ;;  %v427_v24 = vsub.f32 %v410_v7, %v421_v21  ;;  %v2208_v7 = vld [vmem:[%s2923_s4 + $0x40] sm:$0xff]   ;;  %v2214_v17 = vld [vmem:[%s2923_s4 + $0x70] sm:$0xff]  }
 0x32f   :  { %2036 = vmatpush3.bf16.msra.mxu0 %v2208_v7  ;;  %v1752_v20 = vld [vmem:[%s2926_s7] ss:$0 sm:$0xff] }
 0x330   :  { %v431_v25 = vmul.f32 1.442695, %v426_v22  ;;  %v433_v26 = vmul.f32 1.442695, %v427_v24  ;;  %2037 = vmatprep.subr.bf16.mxu0 %v2404_v1 }
 0x331   :  { %v424_v27 = vpop.xlane.xlu0 %423 }
 0x332   :  { %2242 = vpow2.f32 %v431_v25  ;;  %v428_v28 = vsub.f32 %v411_v13, %v424_v27  ;;  %v2210_v13 = vld [vmem:[%s2923_s4 + $0x50] sm:$0xff]  }
 0x333   :  { %2244 = vpow2.f32 %v433_v26  ;;  %2038 = vmatpush3.bf16.msra.mxu0 %v2209_v9 }
 0x334   :  { %v435_v29 = vmul.f32 1.442695, %v428_v28  ;;  %2039 = vmatprep.subr.bf16.mxu0 %v2404_v1 }
 0x336   :  { %2246 = vpow2.f32 %v435_v29 }
 0x337   :  { %2040 = vmatpush3.bf16.msra.mxu0 %v2210_v13 }
 0x338   :  { %v2241_v30 = vpop.eup %2240  ;;  %2041 = vmatprep.subr.bf16.mxu0 %v2404_v1 }
 0x339   :  { %v437_v31 = vsel %vm412_vm2, %v2241_v30, 0.0 }
 0x33a   :  { %438 = vadd.xlane.f32.xlu1 %v437_v31 }
 0x33b   :  { %2042 = vmatpush3.bf16.msra.mxu0 %v2211_v14 }
 0x33c   :  { %v2243_v32 = vpop.eup %2242  ;;  %2043 = vmatprep.subr.bf16.mxu0 %v2404_v1 }
 0x33d   :  { %v2245_v33 = vpop.eup %2244  ;;  %v440_v34 = vsel %vm412_vm2, %v2243_v32, 0.0 }
 0x33e   :  { %441 = vadd.xlane.f32.xlu0 %v440_v34  ;;  %v443_v35 = vsel %vm412_vm2, %v2245_v33, 0.0 }
 0x33f   :  { %444 = vadd.xlane.f32.xlu1 %v443_v35  ;;  %2044 = vmatpush3.bf16.msra.mxu0 %v2212_v15 }
 0x340   :  { %v2247_v38 = vpop.eup %2246  ;;  %2045 = vmatprep.subr.bf16.mxu0 %v2404_v1 }
 0x341   :  { %v446_v40 = vsel %vm412_vm2, %v2247_v38, 0.0 }
 0x342   :  { %447 = vadd.xlane.f32.xlu0 %v446_v40 }
 0x343   :  { %2046 = vmatpush3.bf16.msra.mxu0 %v2213_v16 }
 0x344   :  { %2047 = vmatprep.subr.bf16.mxu0 %v2404_v1 }
 0x347   :  { %2048 = vmatpush3.bf16.msra.mxu0 %v2214_v17 }
 0x348   :  { %2049 = vmatprep.subr.bf16.mxu0 %v2404_v1 }
 0x350   :  { %504 = vrot.lane.b32.xlu1 %v2588_v23, %s2408_s1 }
 0x3c7   :  { %v439_v41 = vpop.xlane.xlu1 %438 }
 0x3c8   :  { %2248 = vrcp.f32 %v439_v41 }
 0x3cb   :  { %v442_v42 = vpop.xlane.xlu0 %441 }
 0x3cc   :  { %2250 = vrcp.f32 %v442_v42  ;;  %v445_v43 = vpop.xlane.xlu1 %444  ;;  %v1801_v42 = vld [vmem:[%s2924_s5 + $0x1] sm:$0x1] }
 0x3cf   :  { %v448_v44 = vpop.xlane.xlu0 %447 }
 0x3d0   :  { %2252 = vrcp.f32 %v448_v44  ;;  %v505_v52 = vpop.permute.xlu1 %504 }
 0x3d1   :  { %2254 = vrcp.f32 %v445_v43 }
 0x3d2   :  { %v2249_v45 = vpop.eup %2248 }
 0x3d3   :  { %v450_v48 = vmul.f32 %v2249_v45, %v2241_v30 }
 0x3d6   :  { %v2251_v46 = vpop.eup %2250 }
 0x3d7   :  { %v452_v49 = vmul.f32 %v2251_v46, %v2243_v32 }
 0x3d9   :  { %v457_v50 = vpack.c.bf16 %v452_v49, %v450_v48 }
 0x3da   :  { %v2253_v51 = vpop.eup %2252 }
 0x3db   :  { %2006 = vmatmul.mubr.msk.bf16.vlgmr.msra.gmra.mrb[8].mxu1 %vm412_vm2, %v457_v50  ;;  %v2255_v53 = vpop.eup %2254  ;;  %v456_v23 = vmul.f32 %v2253_v51, %v2247_v38 }
 0x3dc   :  { %2010 = vmatpush3.bf16.msra.mxu1 %v505_v52  ;;  %2011 = vmatprep.mubr.msk.bf16.mxu1 %vm2405_vm0, %v2404_v1  ;;  %v454_v54 = vmul.f32 %v2255_v53, %v2245_v33  ;;  %v2215_v33 = vld [vmem:[%s2923_s4 + $0x78] sm:$0xff]   ;;  %v868_v52 = vstv %s1803_s27 }
 0x3dd   :  { %2015 = vmatprep.subr.bf16.mxu1 %v2404_v1  ;;  %2050 = vmatpush3.bf16.msra.mxu0 %v2215_v33 }
 0x3de   :  { %v458_v55 = vpack.c.bf16 %v456_v23, %v454_v54  ;;  %2061 = vmatprep.subr.bf16.mxu0 %v2404_v1  ;;  %v869_v23 = vmul.f32 %v868_v52, %v2610_v39 }
 0x3e3   :  { %2012 = vmatmul.mubr.msk.bf16.vlgmr.msra.gmra.mrb[12].mxu1 %vm412_vm2, %v458_v55 }
 0x3e4   :  { %2031 = vmatprep.mubr.msk.bf16.mxu1 %vm2405_vm0, %v2404_v1  ;;  %2016 = vmatpush3.bf16.msra.mxu1 %v2200_v56  ;;  %v870_v56 = vmul.f32 %v868_v52, %v2619_v47 }
 0x3e5   :  { %2017 = vmatprep.subr.bf16.mxu1 %v2404_v1 }
 0x3e8   :  { %2018 = vmatpush3.bf16.msra.mxu1 %v2201_v57  ;;  %v848_v57 = vstv %s1802_s0 }
 0x3e9   :  { %2019 = vmatprep.subr.bf16.mxu1 %v2404_v1  ;;  %v850_v9 = vmul.f32 %v848_v57, %v2619_v47 }
 0x3ec   :  { %2020 = vmatpush3.bf16.msra.mxu1 %v2202_v58 }
 0x3ed   :  { %2021 = vmatprep.subr.bf16.mxu1 %v2404_v1 }
 0x3f0   :  { %2022 = vmatpush3.bf16.msra.mxu1 %v2203_v59 }
 0x3f1   :  { %2023 = vmatprep.subr.bf16.mxu1 %v2404_v1 }
 0x3f4   :  { %2024 = vmatpush3.bf16.msra.mxu1 %v2204_v61 }
 0x3f5   :  { %2025 = vmatprep.subr.bf16.mxu1 %v2404_v1 }
 0x3f8   :  { %2026 = vmatpush3.bf16.msra.mxu1 %v2205_v62 }
 0x3f9   :  { %2027 = vmatprep.subr.bf16.mxu1 %v2404_v1 }
 0x3fc   :  { %2028 = vmatpush3.bf16.msra.mxu1 %v2206_v63  ;;  %v849_v63 = vmul.f32 %v848_v57, %v2610_v39 }
 0x3fd   :  { %2029 = vmatprep.subr.bf16.mxu1 %v2404_v1 }
 0x400   :  { %2030 = vmatpush3.bf16.msra.mxu1 %v2207_v5 }
 0x401   :  { %2055 = vmatprep.subr.bf16.mxu1 %v2404_v1 }
 0x4ae   :  { %v496_v0 = vpop.f32.mrb[8].mxu1 }
 0x4af   :  { %v2007_v2 = vpop.f32.mrb[9].mxu1 }
 0x4b0   :  { %v499_v4 = vpop.f32.mrb[10].mxu1 }
 0x4b1   :  { %v2008_v6 = vpop.f32.mrb[11].mxu1 }
 0x4b6   :  { %v544_v8 = vpop.f32.mrb[12].mxu1 }
 0x4b7   :  { %553 = vrot.lane.b32.xlu0 %v544_v8, %s2409_s14  ;;  %v2013_v10 = vpop.f32.mrb[13].mxu1 }
 0x4b8   :  { %v547_v11 = vpop.f32.mrb[14].mxu1 }
 0x4b9   :  { %555 = vrot.lane.b32.xlu1 %v547_v11, %s2409_s14  ;;  %v2014_v12 = vpop.f32.mrb[15].mxu1 }
 0x529   :  { %v554_v21 = vpop.permute.xlu0 %553 }
 0x52a   :  { %v559_v22 = vsel %vm412_vm2, %v496_v0, %v554_v21 }
 0x52b   :  { %v562_v24 = vsel %vm561_vm6, %v559_v22, 0.0  ;;  %v556_v25 = vpop.permute.xlu1 %555 }
 0x52c   :  { %v571_v26 = vadd.f32 %v1752_v20, %v562_v24  ;;  %v560_v27 = vsel %vm412_vm2, %v499_v4, %v556_v25 }
 0x52d   :  { %v563_v28 = vsel %vm561_vm6, %v560_v27, 0.0 }
 0x52e   :  { %v572_v29 = vadd.f32 %v1752_v20, %v563_v28  ;;  %v573_v30 = vmax.f32 %v571_v26, 0.0 }
 0x530   :  { %v574_v31 = vmax.f32 %v572_v29, 0.0 }
 0x532   :  { %v575_v32 = vpack.c.bf16 %v574_v31, %v573_v30 }
 0x534   :  { %2032 = vmatmul.mubr.bf16.vlgmr.msra.gmra.mrb[16].mxu1 %v575_v32 }
 0x535   :  { %2057 = vmatprep.mubr.msk.bf16.mxu1 %vm2405_vm0, %v2404_v1 }
 0x607   :  { %v675_v34 = vpop.f32.mrb[16].mxu1 }
 0x608   :  { %v2033_v35 = vpop.f32.mrb[17].mxu1 }
 0x609   :  { %v678_v38 = vpop.f32.mrb[18].mxu1 }
 0x60a   :  { %v2729_v40 = vpack.c.bf16 %v678_v38, %v675_v34  ;;  %v2034_v41 = vpop.f32.mrb[19].mxu1 }
 0x60c   :  { %2052 = vmatmul.mubr.bf16.vlgmr.msra.gmra.mrb[4].mxu0 %v2729_v40  ;;  %2056 = vmatpush3.bf16.xpose.msra.mxu1 %v2729_v40 }
 0x60d   :  { %2062 = vmatpush3.bf16.msra.mxu0 %v2729_v40  ;;  %2067 = vmatprep.subr.bf16.mxu1 %v2404_v1 }
 0x60e   :  { %2063 = vmatprep.mubr.msk.bf16.mxu0 %vm2405_vm0, %v2404_v1  ;;  %2073 = vmatprep.subr.bf16.mxu0 %v2404_v1 }
 0x613   :  { %2058 = vmatmul.mubr.bf16.vlgmr.msra.gmra.mrb[20].mxu1 %v1801_v42 }
 0x614   :  { %2069 = vmatprep.mubr.msk.bf16.mxu1 %vm2405_vm0, %v2404_v1 }
 0x6df   :  { %v782_v43 = vpop.f32.mrb[4].mxu0 }
 0x6e0   :  { %854 = vperm.xlu1 %2176, %v782_v43   ;;  %v2053_v44 = vpop.f32.mrb[5].mxu0 }
 0x6e1   :  { %v785_v45 = vpop.f32.mrb[6].mxu0 }
 0x6e2   :  { %858 = vperm.xlu0 %2177, %v785_v45   ;;  %v2054_v46 = vpop.f32.mrb[7].mxu0 }
 0x6e4   :  { %2178 = vset.pattern.permute.xlu1 %v2407_v19 }
 0x6e5   :  { %833 = vperm.xlu1 %2178, %v782_v43  }
 0x6e6   :  { %v825_v48 = vpop.f32.mrb[20].mxu1  ;;  %2181 = vset.pattern.permute.xlu0 %v2407_v19 }
 0x6e7   :  { %v2059_v49 = vpop.f32.mrb[21].mxu1  ;;  %v864_v53 = vrot.slane %v825_v48, %v2605_v37  ;;  %v844_v62 = vrot.slane %v825_v48, %v2603_v36 }
 0x6e8   :  { %v828_v50 = vpop.f32.mrb[22].mxu1 }
 0x6e9   :  { %838 = vperm.xlu1 %2178, %v785_v45   ;;  %v2060_v51 = vpop.f32.mrb[23].mxu1 }
 0x6ed   :  { %2179 = vset.pattern.permute.xlu1 %v2406_v18 }
 0x75f   :  { %v855_v54 = vpop.permute.xlu1 %854 }
 0x760   :  { %v865_v55 = vadd.f32 %v864_v53, %v855_v54 }
 0x761   :  { %v859_v58 = vpop.permute.xlu0 %858 }
 0x762   :  { %v871_v59 = vadd.f32 %v869_v23, %v865_v55  ;;  %v866_v61 = vadd.f32 %v864_v53, %v859_v58 }
 0x764   :  { %v879_v0 = vmul.f32 0.2, %v871_v59  ;;  %v872_v2 = vadd.f32 %v870_v56, %v866_v61  ;;  %v834_v4 = vpop.permute.xlu1 %833  ;;  %vm875_vm7 = vcmp.ge.f32.partialorder %v871_v59, 0.0 }
 0x765   :  { %v845_v5 = vadd.f32 %v844_v62, %v834_v4 }
 0x766   :  { %v880_v6 = vmul.f32 0.2, %v872_v2  ;;  %v883_v7 = vsel %vm875_vm7, %v871_v59, %v879_v0  ;;  %vm876_vm8 = vcmp.ge.f32.partialorder %v872_v2, 0.0 }
 0x767   :  { %v851_v8 = vadd.f32 %v849_v63, %v845_v5  ;;  %v887_v10 = vadd.f32 %v883_v7, %v2626_v60  ;;  %v2217_v7 = vld [vmem:[%s2922_s3 + $0x88] sm:$0xff]  }
 0x768   :  { %v839_v11 = vpop.permute.xlu1 %838  ;;  %v884_v12 = vsel %vm876_vm8, %v872_v2, %v880_v6  ;;  %v2216_v6 = vld [vmem:[%s2922_s3 + $0x80] sm:$0xff]  }
 0x769   :  { %v877_v13 = vmul.f32 0.2, %v851_v8  ;;  %v846_v14 = vadd.f32 %v844_v62, %v839_v11  ;;  %v895_v15 = vsel %vm412_vm2, %v887_v10, -inf  ;;  %v888_v16 = vadd.f32 %v884_v12, %v2632_v3  ;;  %v2221_v11 = vld [vmem:[%s2922_s3 + $0xa8] sm:$0xff]   ;;  %v2222_v12 = vld [vmem:[%s2922_s3 + $0xb0] sm:$0xff]  }
 0x76a   :  { %896 = vmax.xlane.f32.xlu0 %v895_v15  ;;  %vm873_vm9 = vcmp.ge.f32.partialorder %v851_v8, 0.0 }
 0x76b   :  { %v852_v17 = vadd.f32 %v850_v9, %v846_v14  ;;  %v898_v20 = vsel %vm412_vm2, %v888_v16, -inf  ;;  %v881_v21 = vsel %vm873_vm9, %v851_v8, %v877_v13  ;;  %v2218_v8 = vld [vmem:[%s2922_s3 + $0x90] sm:$0xff]   ;;  %v2219_v9 = vld [vmem:[%s2922_s3 + $0x98] sm:$0xff]   ;;  %v2224_v14 = vld [vmem:[%s2923_s4 + $0x80] sm:$0xff]  }
 0x76c   :  { %899 = vmax.xlane.f32.xlu1 %v898_v20  ;;  %v885_v22 = vadd.f32 %v881_v21, %v2626_v60  ;;  %v2223_v13 = vld [vmem:[%s2922_s3 + $0xb8] sm:$0xff]  }
 0x76d   :  { %v878_v24 = vmul.f32 0.2, %v852_v17  ;;  %vm874_vm10 = vcmp.ge.f32.partialorder %v852_v17, 0.0 }
 0x76e   :  { %v889_v25 = vsel %vm412_vm2, %v885_v22, -inf }
 0x76f   :  { %890 = vmax.xlane.f32.xlu0 %v889_v25  ;;  %v882_v26 = vsel %vm874_vm10, %v852_v17, %v878_v24  ;;  %v2227_v25 = vld [vmem:[%s2923_s4 + $0x98] sm:$0xff]  }
 0x770   :  { %v886_v27 = vadd.f32 %v882_v26, %v2632_v3 }
 0x772   :  { %v892_v28 = vsel %vm412_vm2, %v886_v27, -inf }
 0x773   :  { %893 = vmax.xlane.f32.xlu0 %v892_v28 }
 0x7f7   :  { %v897_v29 = vpop.xlane.xlu0 %896 }
 0x7f8   :  { %v903_v30 = vsub.f32 %v887_v10, %v897_v29  ;;  %v2220_v10 = vld [vmem:[%s2922_s3 + $0xa0] sm:$0xff]  }
 0x7f9   :  { %v900_v31 = vpop.xlane.xlu1 %899  ;;  %v2228_v29 = vld [vmem:[%s2923_s4 + $0xa0] sm:$0xff]  }
 0x7fa   :  { %v909_v32 = vmul.f32 1.442695, %v903_v30  ;;  %v904_v33 = vsub.f32 %v888_v16, %v900_v31  ;;  %v2225_v16 = vld [vmem:[%s2923_s4 + $0x88] sm:$0xff]   ;;  %v2230_v31 = vld [vmem:[%s2923_s4 + $0xb0] sm:$0xff]  }
 0x7fb   :  { %v2229_v30 = vld [vmem:[%s2923_s4 + $0xa8] sm:$0xff]  }
 0x7fc   :  { %2256 = vpow2.f32 %v909_v32  ;;  %v911_v34 = vmul.f32 1.442695, %v904_v33  ;;  %v891_v35 = vpop.xlane.xlu0 %890  ;;  %v1807_v32 = vld [vmem:[%s2926_s7 + $0x1] ss:$0 sm:$0xff] }
 0x7fd   :  { %v901_v38 = vsub.f32 %v885_v22, %v891_v35  ;;  %v2226_v22 = vld [vmem:[%s2923_s4 + $0x90] sm:$0xff]  }
 0x7fe   :  { %2258 = vpow2.f32 %v911_v34 }
 0x7ff   :  { %v905_v41 = vmul.f32 1.442695, %v901_v38 }
 0x800   :  { %v894_v42 = vpop.xlane.xlu0 %893 }
 0x801   :  { %2260 = vpow2.f32 %v905_v41  ;;  %v902_v43 = vsub.f32 %v886_v27, %v894_v42 }
 0x803   :  { %v907_v44 = vmul.f32 1.442695, %v902_v43 }
 0x805   :  { %2262 = vpow2.f32 %v907_v44 }
 0x806   :  { %v2257_v45 = vpop.eup %2256 }
 0x807   :  { %v919_v46 = vsel %vm412_vm2, %v2257_v45, 0.0 }
 0x808   :  { %v2259_v48 = vpop.eup %2258  ;;  %920 = vadd.xlane.f32.xlu1 %v919_v46 }
 0x809   :  { %v922_v49 = vsel %vm412_vm2, %v2259_v48, 0.0 }
 0x80a   :  { %923 = vadd.xlane.f32.xlu0 %v922_v49  ;;  %v2231_v49 = vld [vmem:[%s2923_s4 + $0xb8] sm:$0xff]  }
 0x80b   :  { %v2261_v50 = vpop.eup %2260 }
 0x80c   :  { %v913_v51 = vsel %vm412_vm2, %v2261_v50, 0.0 }
 0x80e   :  { %914 = vadd.xlane.f32.xlu0 %v913_v51 }
 0x80f   :  { %v2263_v52 = vpop.eup %2262 }
 0x810   :  { %v916_v53 = vsel %vm412_vm2, %v2263_v52, 0.0 }
 0x812   :  { %917 = vadd.xlane.f32.xlu0 %v916_v53 }
 0x819   :  { %980 = vrot.lane.b32.xlu1 %v2729_v40, %s2408_s1 }
 0x895   :  { %v921_v23 = vpop.xlane.xlu1 %920 }
 0x896   :  { %2264 = vrcp.f32 %v921_v23 }
 0x897   :  { %v924_v54 = vpop.xlane.xlu0 %923 }
 0x898   :  { %2266 = vrcp.f32 %v924_v54  ;;  %v1856_v54 = vld [vmem:[%s2924_s5 + $0x2] sm:$0x1]  ;;  %s1858_s5 = sld [smem:[#allocation2 + $0x101]] }
 0x899   :  { %v981_v55 = vpop.permute.xlu1 %980 }
 0x89a   :  { %2068 = vmatpush3.bf16.msra.mxu1 %v981_v55 }
 0x89b   :  { %v915_v56 = vpop.xlane.xlu0 %914  ;;  %2093 = vmatprep.subr.bf16.mxu1 %v2404_v1 }
 0x89c   :  { %2268 = vrcp.f32 %v915_v56 }
 0x89f   :  { %v918_v57 = vpop.xlane.xlu0 %917 }
 0x8a0   :  { %v2265_v58 = vpop.eup %2264  ;;  %2270 = vrcp.f32 %v918_v57 }
 0x8a1   :  { %v930_v61 = vmul.f32 %v2265_v58, %v2257_v45 }
 0x8a2   :  { %v2267_v59 = vpop.eup %2266 }
 0x8a3   :  { %v932_v62 = vmul.f32 %v2267_v59, %v2259_v48 }
 0x8a5   :  { %v934_v63 = vpack.c.bf16 %v932_v62, %v930_v61 }
 0x8a6   :  { %v2269_v40 = vpop.eup %2268 }
 0x8a7   :  { %2070 = vmatmul.mubr.msk.bf16.vlgmr.msra.gmra.mrb[24].mxu1 %vm412_vm2, %v934_v63  ;;  %v926_v2 = vmul.f32 %v2269_v40, %v2261_v50  ;;  %v1344_v40 = vstv %s1858_s5 }
 0x8a8   :  { %2109 = vmatprep.mubr.msk.bf16.mxu1 %vm2405_vm0, %v2404_v1  ;;  %2094 = vmatpush3.bf16.msra.mxu1 %v2224_v14 }
 0x8a9   :  { %2095 = vmatprep.subr.bf16.mxu1 %v2404_v1 }
 0x8aa   :  { %v2271_v0 = vpop.eup %2270 }
 0x8ab   :  { %v928_v4 = vmul.f32 %v2271_v0, %v2263_v52 }
 0x8ac   :  { %2096 = vmatpush3.bf16.msra.mxu1 %v2225_v16 }
 0x8ad   :  { %v933_v5 = vpack.c.bf16 %v928_v4, %v926_v2  ;;  %2097 = vmatprep.subr.bf16.mxu1 %v2404_v1  ;;  %v1324_v2 = vstv %s1857_s8 }
 0x8af   :  { %2064 = vmatmul.mubr.msk.bf16.vlgmr.msra.gmra.mrb[8].mxu0 %vm412_vm2, %v933_v5  ;;  %v1345_v5 = vmul.f32 %v1344_v40, %v2610_v39 }
 0x8b0   :  { %2089 = vmatprep.mubr.msk.bf16.mxu0 %vm2405_vm0, %v2404_v1  ;;  %2074 = vmatpush3.bf16.msra.mxu0 %v2216_v6 }
 0x8b1   :  { %2075 = vmatprep.subr.bf16.mxu0 %v2404_v1  ;;  %2098 = vmatpush3.bf16.msra.mxu1 %v2226_v22 }
 0x8b2   :  { %2099 = vmatprep.subr.bf16.mxu1 %v2404_v1 }
 0x8b4   :  { %2076 = vmatpush3.bf16.msra.mxu0 %v2217_v7 }
 0x8b5   :  { %2077 = vmatprep.subr.bf16.mxu0 %v2404_v1  ;;  %2100 = vmatpush3.bf16.msra.mxu1 %v2227_v25 }
 0x8b6   :  { %2101 = vmatprep.subr.bf16.mxu1 %v2404_v1 }
 0x8b8   :  { %2078 = vmatpush3.bf16.msra.mxu0 %v2218_v8 }
 0x8b9   :  { %2079 = vmatprep.subr.bf16.mxu0 %v2404_v1  ;;  %2102 = vmatpush3.bf16.msra.mxu1 %v2228_v29 }
 0x8ba   :  { %2103 = vmatprep.subr.bf16.mxu1 %v2404_v1 }
 0x8bc   :  { %2080 = vmatpush3.bf16.msra.mxu0 %v2219_v9 }
 0x8bd   :  { %2081 = vmatprep.subr.bf16.mxu0 %v2404_v1  ;;  %2104 = vmatpush3.bf16.msra.mxu1 %v2229_v30 }
 0x8be   :  { %2105 = vmatprep.subr.bf16.mxu1 %v2404_v1 }
 0x8c0   :  { %2082 = vmatpush3.bf16.msra.mxu0 %v2220_v10  ;;  %v1346_v10 = vmul.f32 %v1344_v40, %v2619_v47 }
 0x8c1   :  { %2083 = vmatprep.subr.bf16.mxu0 %v2404_v1  ;;  %2106 = vmatpush3.bf16.msra.mxu1 %v2230_v31 }
 0x8c2   :  { %2107 = vmatprep.subr.bf16.mxu1 %v2404_v1 }
 0x8c4   :  { %2084 = vmatpush3.bf16.msra.mxu0 %v2221_v11 }
 0x8c5   :  { %2085 = vmatprep.subr.bf16.mxu0 %v2404_v1  ;;  %2108 = vmatpush3.bf16.msra.mxu1 %v2231_v49 }
 0x8c6   :  { %2119 = vmatprep.subr.bf16.mxu1 %v2404_v1 }
 0x8c8   :  { %2086 = vmatpush3.bf16.msra.mxu0 %v2222_v12 }
 0x8c9   :  { %2087 = vmatprep.subr.bf16.mxu0 %v2404_v1 }
 0x8cc   :  { %2088 = vmatpush3.bf16.msra.mxu0 %v2223_v13 }
 0x8cd   :  { %2113 = vmatprep.subr.bf16.mxu0 %v2404_v1 }
 0x97a   :  { %v1020_v15 = vpop.f32.mrb[24].mxu1 }
 0x97b   :  { %1029 = vrot.lane.b32.xlu0 %v1020_v15, %s2409_s14  ;;  %v2071_v17 = vpop.f32.mrb[25].mxu1 }
 0x97c   :  { %v1023_v20 = vpop.f32.mrb[26].mxu1 }
 0x97d   :  { %1031 = vrot.lane.b32.xlu1 %v1023_v20, %s2409_s14  ;;  %v2072_v21 = vpop.f32.mrb[27].mxu1 }
 0x982   :  { %v972_v24 = vpop.f32.mrb[8].mxu0 }
 0x983   :  { %v2065_v26 = vpop.f32.mrb[9].mxu0 }
 0x984   :  { %v975_v27 = vpop.f32.mrb[10].mxu0 }
 0x985   :  { %v2066_v28 = vpop.f32.mrb[11].mxu0 }
 0x9ed   :  { %v1030_v33 = vpop.permute.xlu0 %1029 }
 0x9ee   :  { %v1035_v34 = vsel %vm412_vm2, %v972_v24, %v1030_v33 }
 0x9ef   :  { %v1037_v35 = vsel %vm561_vm6, %v1035_v34, 0.0  ;;  %v1032_v38 = vpop.permute.xlu1 %1031 }
 0x9f0   :  { %v1047_v41 = vadd.f32 %v1807_v32, %v1037_v35  ;;  %v1036_v42 = vsel %vm412_vm2, %v975_v27, %v1032_v38 }
 0x9f1   :  { %v1038_v43 = vsel %vm561_vm6, %v1036_v42, 0.0 }
 0x9f2   :  { %v1048_v44 = vadd.f32 %v1807_v32, %v1038_v43  ;;  %v1049_v45 = vmax.f32 %v1047_v41, 0.0 }
 0x9f4   :  { %v1050_v46 = vmax.f32 %v1048_v44, 0.0 }
 0x9f6   :  { %v1051_v48 = vpack.c.bf16 %v1050_v46, %v1049_v45 }
 0x9f8   :  { %2090 = vmatmul.mubr.bf16.vlgmr.msra.gmra.mrb[12].mxu0 %v1051_v48 }
 0x9f9   :  { %2115 = vmatprep.mubr.msk.bf16.mxu0 %vm2405_vm0, %v2404_v1 }
 0xacb   :  { %v1151_v50 = vpop.f32.mrb[12].mxu0 }
 0xacc   :  { %v2091_v51 = vpop.f32.mrb[13].mxu0 }
 0xacd   :  { %v1154_v52 = vpop.f32.mrb[14].mxu0 }
 0xace   :  { %v2848_v53 = vpack.c.bf16 %v1154_v52, %v1151_v50  ;;  %v2092_v23 = vpop.f32.mrb[15].mxu0 }
 0xad0   :  { %2110 = vmatmul.mubr.bf16.vlgmr.msra.gmra.mrb[28].mxu1 %v2848_v53  ;;  %2114 = vmatpush3.bf16.xpose.msra.mxu0 %v2848_v53 }
 0xad1   :  { %2120 = vmatpush3.bf16.msra.mxu1 %v2848_v53  ;;  %2125 = vmatprep.subr.bf16.mxu0 %v2404_v1 }
 0xad2   :  { %2121 = vmatprep.mubr.msk.bf16.mxu1 %vm2405_vm0, %v2404_v1 }
 0xad7   :  { %2116 = vmatmul.mubr.bf16.vlgmr.msra.gmra.mrb[16].mxu0 %v1856_v54 }
 0xad8   :  { %2127 = vmatprep.mubr.msk.bf16.mxu0 %vm2405_vm0, %v2404_v1 }
 0xba3   :  { %v1258_v55 = vpop.f32.mrb[28].mxu1 }
 0xba4   :  { %1330 = vperm.xlu1 %2179, %v1258_v55   ;;  %v2111_v56 = vpop.f32.mrb[29].mxu1 }
 0xba5   :  { %v1261_v57 = vpop.f32.mrb[30].mxu1 }
 0xba6   :  { %1314 = vperm.xlu0 %2181, %v1261_v57   ;;  %v2112_v58 = vpop.f32.mrb[31].mxu1 }
 0xba8   :  { %1334 = vperm.xlu1 %2179, %v1261_v57  }
 0xbaa   :  { %v1301_v59 = vpop.f32.mrb[16].mxu0  ;;  %2182 = vset.pattern.permute.xlu0 %v2406_v18  ;;  %v1326_v18 = vmul.f32 %v1324_v2, %v2619_v47 }
 0xbab   :  { %v2117_v61 = vpop.f32.mrb[17].mxu0  ;;  %v1340_v0 = vrot.slane %v1301_v59, %v2605_v37  ;;  %v1320_v4 = vrot.slane %v1301_v59, %v2603_v36  ;;  %v1325_v36 = vmul.f32 %v1324_v2, %v2610_v39 }
 0xbac   :  { %2180 = vset.pattern.permute.xlu1 %v2407_v19  ;;  %v1304_v62 = vpop.f32.mrb[18].mxu0 }
 0xbad   :  { %1309 = vperm.xlu1 %2180, %v1258_v55   ;;  %v2118_v63 = vpop.f32.mrb[19].mxu0 }
 0xc23   :  { %v1331_v6 = vpop.permute.xlu1 %1330 }
 0xc24   :  { %v1341_v7 = vadd.f32 %v1340_v0, %v1331_v6 }
 0xc25   :  { %v1315_v8 = vpop.permute.xlu0 %1314 }
 0xc26   :  { %v1347_v9 = vadd.f32 %v1345_v5, %v1341_v7  ;;  %v1322_v19 = vadd.f32 %v1320_v4, %v1315_v8  ;;  %v2410_v8 = vmov 0.0|0.0  }
 0xc27   :  { %v1335_v11 = vpop.permute.xlu1 %1334  ;;  %2158 = vmatprep.subr.bf16.mxu1 %v2410_v8 }
 0xc28   :  { %v1355_v12 = vmul.f32 0.2, %v1347_v9  ;;  %v1328_v13 = vadd.f32 %v1326_v18, %v1322_v19  ;;  %v1342_v14 = vadd.f32 %v1340_v0, %v1335_v11  ;;  %vm1351_vm11 = vcmp.ge.f32.partialorder %v1347_v9, 0.0 }
 0xc2a   :  { %v1354_v37 = vmul.f32 0.2, %v1328_v13  ;;  %v1348_v15 = vadd.f32 %v1346_v10, %v1342_v14  ;;  %v1359_v16 = vsel %vm1351_vm11, %v1347_v9, %v1355_v12  ;;  %vm1350_vm12 = vcmp.ge.f32.partialorder %v1328_v13, 0.0  ;;  %v2232_v10 = vld [vmem:[#allocation7] sm:$0xff]   ;;  %v2234_v14 = vld [vmem:[#allocation7 + $0x10] sm:$0xff]  }
 0xc2b   :  { %v1363_v17 = vadd.f32 %v1359_v16, %v2626_v60 }
 0xc2c   :  { %v1356_v20 = vmul.f32 0.2, %v1348_v15  ;;  %v1310_v21 = vpop.permute.xlu1 %1309  ;;  %vm1352_vm13 = vcmp.ge.f32.partialorder %v1348_v15, 0.0  ;;  %v1358_v25 = vsel %vm1350_vm12, %v1328_v13, %v1354_v37  ;;  %v2233_v13 = vld [vmem:[#allocation7 + $0x8] sm:$0xff]  }
 0xc2d   :  { %v1321_v22 = vadd.f32 %v1320_v4, %v1310_v21  ;;  %v1371_v24 = vsel %vm412_vm2, %v1363_v17, -inf  ;;  %v1362_v39 = vadd.f32 %v1358_v25, %v2632_v3  ;;  %v2237_v21 = vld [vmem:[#allocation7 + $0x28] sm:$0xff]  }
 0xc2e   :  { %1372 = vmax.xlane.f32.xlu1 %v1371_v24  ;;  %v1360_v47 = vsel %vm1352_vm13, %v1348_v15, %v1356_v20  ;;  %v2236_v20 = vld [vmem:[#allocation7 + $0x20] sm:$0xff]  }
 0xc2f   :  { %v1327_v26 = vadd.f32 %v1325_v36, %v1321_v22  ;;  %v1364_v27 = vadd.f32 %v1360_v47, %v2632_v3  ;;  %v1368_v32 = vsel %vm412_vm2, %v1362_v39, -inf  ;;  %v2235_v36 = vld [vmem:[#allocation7 + $0x18] sm:$0xff]   ;;  %v2238_v22 = vld [vmem:[#allocation7 + $0x30] sm:$0xff]   ;;  %v1862_v24 = vld [vmem:[%s2926_s7 + $0x2] ss:$0 sm:$0xff]  ;;  %s2411_s7 = smov [#allocation10]  }
 0xc30   :  { %s1721_s17 = sshll.u32 %s2411_s7, 4  ;;  %s1722_s17 = int_to_ptr.vmem [resolvable:$true] %s1721_s17 }
 0xc31   :  { %v1353_v28 = vmul.f32 0.2, %v1327_v26  ;;  %v1374_v29 = vsel %vm412_vm2, %v1364_v27, -inf  ;;  %vm1349_vm14 = vcmp.ge.f32.partialorder %v1327_v26, 0.0  ;;  %s2368_s22 = scalar_lea.vmem %s1722_s17, 32  ;;  %p2373_p2 = scmp.lt.s32.totalorder %s1722_s17, %s1722_s17 }
 0xc32   :  { %1375 = vmax.xlane.f32.xlu0 %v1374_v29  ;;  %p2369_p1 = scmp.ne.s32.totalorder %s1722_s17, %s2368_s22  ;;  %p2374_p3 = scmp.lt.s32.totalorder %s2368_s22, %s2368_s22 }
 0xc33   :  { %v1357_v30 = vsel %vm1349_vm14, %v1327_v26, %v1353_v28 }
 0xc34   :  { %v1361_v31 = vadd.f32 %v1357_v30, %v2626_v60  ;;  %p2375_p4 = por %p2374_p3, %p2373_p2 }
 0xc36   :  { %1369 = vmax.xlane.f32.xlu0 %v1368_v32  ;;  %v1365_v33 = vsel %vm412_vm2, %v1361_v31, -inf  ;;  %p2376_p5 = pnand %p2375_p4, %p2369_p1 }
 0xc37   :  { %1366 = vmax.xlane.f32.xlu1 %v1365_v33 }
 0xcbb   :  { %v1373_v34 = vpop.xlane.xlu1 %1372 }
 0xcbc   :  { %v1379_v35 = vsub.f32 %v1363_v17, %v1373_v34  ;;  %v2239_v34 = vld [vmem:[#allocation7 + $0x38] sm:$0xff]  }
 0xcbe   :  { %v1385_v38 = vmul.f32 1.442695, %v1379_v35 }
 0xcbf   :  { %v1376_v41 = vpop.xlane.xlu0 %1375 }
 0xcc0   :  { %2272 = vpow2.f32 %v1385_v38  ;;  %v1380_v42 = vsub.f32 %v1364_v27, %v1376_v41 }
 0xcc2   :  { %v1387_v43 = vmul.f32 1.442695, %v1380_v42  ;;  %v1864_v42 = vld [vmem:[#allocation9] ss:$0 sm:$0xff] }
 0xcc3   :  { %v1370_v44 = vpop.xlane.xlu0 %1369 }
 0xcc4   :  { %2274 = vpow2.f32 %v1387_v43  ;;  %v1378_v3 = vsub.f32 %v1362_v39, %v1370_v44  ;;  %v1367_v45 = vpop.xlane.xlu1 %1366 }
 0xcc5   :  { %v1377_v46 = vsub.f32 %v1361_v31, %v1367_v45 }
 0xcc6   :  { %v1383_v48 = vmul.f32 1.442695, %v1378_v3 }
 0xcc7   :  { %v1381_v60 = vmul.f32 1.442695, %v1377_v46 }
 0xcc9   :  { %2276 = vpow2.f32 %v1381_v60 }
 0xcca   :  { %v2273_v49 = vpop.eup %2272  ;;  %2278 = vpow2.f32 %v1383_v48 }
 0xccb   :  { %v1395_v50 = vsel %vm412_vm2, %v2273_v49, 0.0 }
 0xccc   :  { %1396 = vadd.xlane.f32.xlu1 %v1395_v50 }
 0xcce   :  { %v2275_v51 = vpop.eup %2274 }
 0xccf   :  { %v1398_v52 = vsel %vm412_vm2, %v2275_v51, 0.0 }
 0xcd0   :  { %1399 = vadd.xlane.f32.xlu0 %v1398_v52 }
 0xcd3   :  { %v2277_v23 = vpop.eup %2276 }
 0xcd4   :  { %v1389_v54 = vsel %vm412_vm2, %v2277_v23, 0.0  ;;  %v2279_v55 = vpop.eup %2278 }
 0xcd5   :  { %1390 = vadd.xlane.f32.xlu0 %v1389_v54  ;;  %v1392_v56 = vsel %vm412_vm2, %v2279_v55, 0.0 }
 0xcd9   :  { %1393 = vadd.xlane.f32.xlu0 %v1392_v56 }
 0xcdd   :  { %1456 = vrot.lane.b32.xlu1 %v2848_v53, %s2408_s1 }
 0xd59   :  { %v1397_v57 = vpop.xlane.xlu1 %1396 }
 0xd5a   :  { %2280 = vrcp.f32 %v1397_v57 }
 0xd5d   :  { %v1400_v58 = vpop.xlane.xlu0 %1399  ;;  %v1457_v59 = vpop.permute.xlu1 %1456 }
 0xd5e   :  { %2282 = vrcp.f32 %v1400_v58  ;;  %2126 = vmatpush3.bf16.msra.mxu0 %v1457_v59 }
 0xd5f   :  { %2138 = vmatprep.subr.bf16.mxu0 %v2404_v1 }
 0xd62   :  { %v1391_v61 = vpop.xlane.xlu0 %1390 }
 0xd63   :  { %2284 = vrcp.f32 %v1391_v61 }
 0xd64   :  { %v2281_v62 = vpop.eup %2280 }
 0xd65   :  { %v1406_v0 = vmul.f32 %v2281_v62, %v2273_v49 }
 0xd66   :  { %v1394_v63 = vpop.xlane.xlu0 %1393 }
 0xd67   :  { %2286 = vrcp.f32 %v1394_v63 }
 0xd68   :  { %v2283_v40 = vpop.eup %2282 }
 0xd69   :  { %v1408_v2 = vmul.f32 %v2283_v40, %v2275_v51 }
 0xd6b   :  { %v1410_v4 = vpack.c.bf16 %v1408_v2, %v1406_v0 }
 0xd6d   :  { %2128 = vmatmul.mubr.msk.bf16.vlgmr.msra.gmra.mrb[20].mxu0 %vm412_vm2, %v1410_v4  ;;  %v2285_v53 = vpop.eup %2284 }
 0xd6e   :  { %2154 = vmatprep.mubr.msk.bf16.mxu0 %vm2405_vm0, %v2404_v1  ;;  %v1402_v6 = vmul.f32 %v2285_v53, %v2277_v23  ;;  %2139 = vmatpush3.bf16.msra.mxu0 %v2232_v10 }
 0xd6f   :  { %2140 = vmatprep.subr.bf16.mxu0 %v2404_v1 }
 0xd71   :  { %v2287_v5 = vpop.eup %2286 }
 0xd72   :  { %v1404_v7 = vmul.f32 %v2287_v5, %v2279_v55  ;;  %2141 = vmatpush3.bf16.msra.mxu0 %v2233_v13 }
 0xd73   :  { %2142 = vmatprep.subr.bf16.mxu0 %v2404_v1 }
 0xd74   :  { %v1409_v18 = vpack.c.bf16 %v1404_v7, %v1402_v6 }
 0xd76   :  { %2122 = vmatmul.mubr.msk.bf16.vlgmr.msra.gmra.mrb[32].mxu1 %vm412_vm2, %v1409_v18  ;;  %2143 = vmatpush3.bf16.msra.mxu0 %v2234_v14 }
 0xd77   :  { %2135 = vmatprep.mubr.msk.f32.mxu1 %vm2405_vm0, %v2404_v1  ;;  %2144 = vmatprep.subr.bf16.mxu0 %v2404_v1 }
 0xd7a   :  { %2145 = vmatpush3.bf16.msra.mxu0 %v2235_v36 }
 0xd7b   :  { %2146 = vmatprep.subr.bf16.mxu0 %v2404_v1 }
 0xd7e   :  { %2147 = vmatpush3.bf16.msra.mxu0 %v2236_v20 }
 0xd7f   :  { %2148 = vmatprep.subr.bf16.mxu0 %v2404_v1 }
 0xd82   :  { %2149 = vmatpush3.bf16.msra.mxu0 %v2237_v21 }
 0xd83   :  { %2150 = vmatprep.subr.bf16.mxu0 %v2404_v1 }
 0xd86   :  { %2151 = vmatpush3.bf16.msra.mxu0 %v2238_v22 }
 0xd87   :  { %2152 = vmatprep.subr.bf16.mxu0 %v2404_v1  ;;  %v1527_v1 = vld [vmem:[#allocation6] sm:$0x3] }
 0xd8a   :  { %2153 = vmatpush3.bf16.msra.mxu0 %v2239_v34 }
 0xe40   :  { %v1496_v9 = vpop.f32.mrb[20].mxu0 }
 0xe41   :  { %1505 = vrot.lane.b32.xlu0 %v1496_v9, %s2409_s14  ;;  %v2129_v19 = vpop.f32.mrb[21].mxu0 }
 0xe42   :  { %v1499_v11 = vpop.f32.mrb[22].mxu0 }
 0xe43   :  { %1507 = vrot.lane.b32.xlu1 %v1499_v11, %s2409_s14  ;;  %v2130_v12 = vpop.f32.mrb[23].mxu0 }
 0xe49   :  { %v1448_v37 = vpop.f32.mrb[32].mxu1 }
 0xe4a   :  { %v2123_v15 = vpop.f32.mrb[33].mxu1 }
 0xe4b   :  { %v1451_v16 = vpop.f32.mrb[34].mxu1 }
 0xe4c   :  { %v2124_v17 = vpop.f32.mrb[35].mxu1 }
 0xeb3   :  { %v1506_v47 = vpop.permute.xlu0 %1505 }
 0xeb4   :  { %v1511_v25 = vsel %vm412_vm2, %v1448_v37, %v1506_v47 }
 0xeb5   :  { %v1513_v26 = vsel %vm561_vm6, %v1511_v25, 0.0  ;;  %v1508_v27 = vpop.permute.xlu1 %1507 }
 0xeb6   :  { %v1523_v28 = vadd.f32 %v1862_v24, %v1513_v26  ;;  %v1512_v29 = vsel %vm412_vm2, %v1451_v16, %v1508_v27 }
 0xeb7   :  { %v1514_v39 = vsel %vm561_vm6, %v1512_v29, 0.0 }
 0xeb8   :  { %v1524_v30 = vadd.f32 %v1862_v24, %v1514_v39  ;;  %v1525_v31 = vmax.f32 %v1523_v28, 0.0 }
 0xeba   :  { %v1526_v32 = vmax.f32 %v1524_v30, 0.0 }
 0xebc   :  { %v2159_v33 = vpack.c.bf16 %v1526_v32, %v1525_v31 }
 0xebe   :  { %2160 = vmatpush3.bf16.msra.mxu1 %v2159_v33 }
 0xec1   :  { %2136 = vmatmul.mubr.msk.f32.vlgmr.msra.gmra.mrb[36].mxu1 %vm412_vm2, %v1527_v1 }
 0xf94   :  { %v1597_v35 = vpop.f32.mrb[36].mxu1 }
 0xf95   :  { %v1601_v38 = vpack.c.bf16 %v1597_v35, %v1597_v35  ;;  %v2137_v41 = vpop.f32.mrb[37].mxu1 }
 0xf97   :  { %2155 = vmatmul.mubr.bf16.vlgmr.msra.gmra.mrb[24].mxu0 %v1601_v38 }
0x106a   :  { %v1707_v43 = vpop.f32.mrb[24].mxu0 }
0x106b   :  { %v1708_v44 = vadd.f32 %v1864_v42, %v1707_v43  ;;  %v2156_v3 = vpop.f32.mrb[25].mxu0 }
0x106c   :  { %v1710_v45 = vpop.f32.mrb[26].mxu0 }
0x106d   :  { %2288 = vtanh.f32 %v1708_v44  ;;  %v2157_v46 = vpop.f32.mrb[27].mxu0 }
0x1077   :  { %v2289_v48 = vpop.eup %2288 }
0x1078   :  { %1714 = vst [vmem:[#allocation10] sm:$0x3] %v2289_v48 }
0x1079   :  { %2379 = shalt.err (!%p2376_p5)
}
0x107a   :  { %s2380_s18 = scalar_lea.hbm %s2930_s11, 32 }
0x107b   :  { %p2381_p6 = scmp.ne.s32.totalorder %s2930_s11, %s2380_s18  ;;  %p2384_p7 = scmp.lt.u32.totalorder %s2380_s18, %s2930_s11 }
0x107d   :  { %p2386_p8 = pnand %p2384_p7, %p2381_p6 }
0x107f   :  { %2389 = shalt.err (!%p2386_p8)
}
0x1080   :  { %1724 = dma.vmem_to_hbm [thread:$0]  %s1722_s17, 32, %s2930_s11, [#allocation4]  }
0x1081   :  { %2396 = dma.done.wait [#allocation4], 32  }
0x1082   :  { %2397 = vsyncadd [#allocation4], 4294967264 }
0x1083   :  { %1728 = vsyncpa [#allocation3], 1 }
0x1084   :  { %1729 = vsyncpa [#allocation8], 1 }
0x1085   :  { %1730 = vsyncpa [#allocation4], 1 }
0x1086   :  { %1731 = vsyncpa [#allocation5], 1 }

</bundles_post_ra>
